<compile_context>
chip_gen: v7x
topology: tpu7x:2x2x1
jax: 0.10.0
libtpu: 0.0.40
codegen_flags: <defaults>
</compile_context>

<pallas_src>
import functools

import jax
import jax.numpy as jnp
from jax.experimental import pallas as pl
from jax.experimental.pallas import tpu as pltpu


def _round_up(x, m):
    return ((x + m - 1) // m) * m


def _k_tiling(k_dim):
    """Padded K extent and K-tile depth (512-deep bf16 tiles for large K)."""
    if k_dim <= 512:
        return k_dim, k_dim
    return _round_up(k_dim, 512), 512


# ----------------------------- Pallas kernel -------------------------------

def _conv_mm_kernel(a_ref, w_ref, scale_ref, shift_ref, o_ref, acc_ref, *, act):
    """Tiled bf16 matmul, f32 accumulation, fused affine + LeakyReLU(0.2)."""
    k = pl.program_id(2)

    @pl.when(k == 0)
    def _():
        acc_ref[...] = jnp.zeros_like(acc_ref)

    acc_ref[...] += jnp.dot(a_ref[...], w_ref[...],
                            preferred_element_type=jnp.float32)

    @pl.when(k == pl.num_programs(2) - 1)
    def _():
        y = acc_ref[...] * scale_ref[...] + shift_ref[...]
        if act:
            y = jnp.where(y >= 0, y, 0.2 * y)     # LeakyReLU(0.2)
        o_ref[...] = y.astype(o_ref.dtype)


def conv_matmul(patches, w_pad, scale, shift, *, act, cout, out_dtype):
    """patches: [M, K] float, w_pad: [Kp, Np] bf16 (pre-padded at init),
    scale/shift: [1, Np] f32.  Returns [M, cout] in out_dtype."""
    M, K = patches.shape
    Kp, Np = w_pad.shape

    # M tiling: cap tm so VMEM never scales with N*OH*OW; 16-aligned for bf16.
    m16 = _round_up(M, 16)
    tm = m16 if m16 <= 256 else 256
    Mp = _round_up(M, tm)

    tk = Kp if Kp <= 512 else 512          # matches _k_tiling used at init
    tn = Np if Np <= 256 else 256          # Np is a multiple of 128

    a = patches.astype(jnp.bfloat16)
    if Mp != M or Kp != K:
        a = jnp.pad(a, ((0, Mp - M), (0, Kp - K)))   # deficit-only padding

    nk = Kp // tk
    grid = (Mp // tm, Np // tn, nk)

    # Deeper weight-stream buffering only pays off on long K reductions.
    if nk >= 4:
        w_spec = pl.BlockSpec((tk, tn), lambda i, j, k: (k, j),
                              pipeline_mode=pl.Buffered(3))
    else:
        w_spec = pl.BlockSpec((tk, tn), lambda i, j, k: (k, j))

    out = pl.pallas_call(
        functools.partial(_conv_mm_kernel, act=act),
        out_shape=jax.ShapeDtypeStruct((Mp, Np), out_dtype),
        grid_spec=pltpu.PrefetchScalarGridSpec(
            num_scalar_prefetch=0,
            grid=grid,
            in_specs=[
                pl.BlockSpec((tm, tk), lambda i, j, k: (i, k)),
                w_spec,
                pl.BlockSpec((1, tn), lambda i, j, k: (0, j)),
                pl.BlockSpec((1, tn), lambda i, j, k: (0, j)),
            ],
            out_specs=pl.BlockSpec((tm, tn), lambda i, j, k: (i, j)),
            scratch_shapes=[pltpu.VMEM((tm, tn), jnp.float32)],
        ),
        compiler_params=pltpu.CompilerParams(
            dimension_semantics=("parallel", "parallel", "arbitrary"),
            vmem_limit_bytes=64 * 1024 * 1024),
    )(a, w_pad, scale, shift)
    return out[:M, :cout]


# ------------------------------- JAX glue ----------------------------------

def im2col(x_nhwc, k, s, p):
    """Extract k x k patches with stride s and padding p (NHWC input)."""
    # TODO(synk): a shift-and-accumulate formulation (K grid axis over the 16
    # kernel taps with strided index_maps into the padded NHWC activation)
    # would avoid the k*k activation blowup; im2col is kept for robustness.
    xpad = jnp.pad(x_nhwc, ((0, 0), (p, p), (p, p), (0, 0)))
    N, H, W, C = xpad.shape
    OH = (H - k) // s + 1
    OW = (W - k) // s + 1
    cols = []
    for di in range(k):
        for dj in range(k):
            cols.append(xpad[:, di:di + s * OH:s, dj:dj + s * OW:s, :])
    pat = jnp.concatenate(cols, axis=-1)          # [N, OH, OW, k*k*C]
    return pat.reshape(N * OH * OW, k * k * C), (N, OH, OW)


def init_discriminator_params(key, c, nf=64, nd=3):
    """Synthetic params matching the PyTorch module shapes, pre-packed for the
    Pallas matmul: weights as [Kp, Np] bf16, affine as [1, Np] f32."""
    eps = 1e-5
    # (cin, cout, stride, has_norm, has_act) per layer of the Sequential.
    specs = [(c, nf, 2, False, True)]
    for i in range(nd):
        specs.append((nf * 2 ** i, nf * 2 ** (i + 1),
                      1 if i == nd - 1 else 2, True, True))
    specs.append((nf * 2 ** nd, 1, 1, False, False))

    params = []
    for (cin, cout, s, norm, act) in specs:
        key, kw, kb, kg, kbt = jax.random.split(key, 5)
        w = 0.05 * jax.random.normal(kw, (cout, cin, 4, 4), jnp.float32)
        if norm:
            gamma = 1.0 + 0.1 * jax.random.normal(kg, (cout,), jnp.float32)
            beta = 0.1 * jax.random.normal(kbt, (cout,), jnp.float32)
            # Eval-mode BatchNorm with fresh running stats (mean=0, var=1)
            # reduces to a per-channel affine.
            scale = gamma / jnp.sqrt(1.0 + eps)
            shift = beta
        else:
            scale = jnp.ones((cout,), jnp.float32)
            shift = 0.05 * jax.random.normal(kb, (cout,), jnp.float32)

        # Pre-pack once: [Cout, Cin, KH, KW] -> [KH*KW*Cin, Cout] (matches the
        # (di, dj, c) ordering of im2col), pad K/N, cast weights to bf16.
        k_dim = 4 * 4 * cin
        kp, _ = _k_tiling(k_dim)
        np_ = _round_up(cout, 128)
        wt = jnp.transpose(w, (2, 3, 1, 0)).reshape(k_dim, cout)
        w_pad = jnp.zeros((kp, np_), jnp.bfloat16).at[:k_dim, :cout].set(
            wt.astype(jnp.bfloat16))
        sc = jnp.zeros((1, np_), jnp.float32).at[0, :cout].set(scale)
        sh = jnp.zeros((1, np_), jnp.float32).at[0, :cout].set(shift)

        params.append({"w_pad": w_pad, "scale": sc, "shift": sh,
                       "stride": s, "act": act, "cout": cout})
    return params


def discriminator_forward(params, x_nchw):
    """Forward pass.  BatchNorm is applied in eval mode (running mean=0,
    var=1), i.e. a fused per-channel affine."""
    # TODO(synk): training-mode BatchNorm (batch statistics) would need an
    # additional per-channel N*H*W reduction pass; eval-mode is used here.
    x = jnp.transpose(x_nchw, (0, 2, 3, 1)).astype(jnp.bfloat16)  # NCHW->NHWC
    last = len(params) - 1
    for li, p in enumerate(params):
        patches, (N, OH, OW) = im2col(x, 4, p["stride"], 1)
        out_dtype = jnp.float32 if li == last else jnp.bfloat16
        y = conv_matmul(patches, p["w_pad"], p["scale"], p["shift"],
                        act=p["act"], cout=p["cout"], out_dtype=out_dtype)
        x = y.reshape(N, OH, OW, p["cout"])
    return jnp.transpose(x, (0, 3, 1, 2))        # NHWC -> NCHW


# --------------------------------- main -------------------------------------

if __name__ == "__main__":
    key = jax.random.PRNGKey(0)
    kx, kp = jax.random.split(key)

    # Small but valid shapes: spatial 32 keeps every conv output >= 1.
    batch, c, h, w = 2, 3, 32, 32
    nf, nd = 8, 3
    x = jax.random.normal(kx, (batch, c, h, w), jnp.float32)

    params = init_discriminator_params(kp, c, nf=nf, nd=nd)
    fwd = jax.jit(lambda xx: discriminator_forward(params, xx))
    y = jax.block_until_ready(fwd(x))

    # Expected PatchGAN map: (2, 1, 2, 2) for 32x32 input with nf=8, nd=3.
    assert y.shape == (batch, 1, 2, 2), y.shape
    assert y.dtype == jnp.float32
    print("KERNEL_OK")
</pallas_src>

<mosaic_0001>
module attributes {stable_mosaic.version = 11 : i64} {
  func.func @_conv_mm_kernel(%arg0: i32, %arg1: i32, %arg2: i32, %arg3: memref<256x48xbf16, #tpu.memory_space<vmem>>, %arg4: memref<48x128xbf16, #tpu.memory_space<vmem>>, %arg5: memref<1x128xf32, #tpu.memory_space<vmem>>, %arg6: memref<1x128xf32, #tpu.memory_space<vmem>>, %arg7: memref<256x128xbf16, #tpu.memory_space<vmem>>, %arg8: memref<256x128xf32, #tpu.memory_space<vmem>>) attributes {dimension_semantics = [#tpu.dimension_semantics<parallel>, #tpu.dimension_semantics<parallel>, #tpu.dimension_semantics<arbitrary>], iteration_bounds = array<i64: 2, 1, 1>, scalar_prefetch = 0 : i64, scratch_operands = 1 : i64, tpu.core_type = #tpu.core_type<tc>, window_params = [{transform_indices = @transform_0, window_bounds = array<i64: 256, 48>}, {transform_indices = @transform_1, window_bounds = array<i64: 48, 128>}, {transform_indices = @transform_2, window_bounds = array<i64: 1, 128>}, {transform_indices = @transform_3, window_bounds = array<i64: 1, 128>}, {transform_indices = @transform_4, window_bounds = array<i64: 256, 128>}]} {
    %c0_i32 = arith.constant 0 : i32
    %0 = arith.cmpi eq, %arg2, %c0_i32 : i32
    %1 = arith.extui %0 : i1 to i32
    %c0_i32_0 = arith.constant 0 : i32
    %2 = arith.cmpi ne, %1, %c0_i32_0 : i32
    scf.if %2 {
      %cst_10 = arith.constant 0.000000e+00 : f32
      %12 = vector.broadcast %cst_10 : f32 to vector<256x128xf32>
      %c0_11 = arith.constant 0 : index
      %c0_12 = arith.constant 0 : index
      %13 = vector.load %arg8[%c0_11, %c0_12] : memref<256x128xf32, #tpu.memory_space<vmem>>, vector<256x128xf32>
      tpu.vector_store %arg8[%c0_11, %c0_12], %12 {strides = array<i32>} : memref<256x128xf32, #tpu.memory_space<vmem>>, vector<256x128xf32>,
    } else {
    }
    %c0 = arith.constant 0 : index
    %c0_1 = arith.constant 0 : index
    %3 = vector.load %arg8[%c0, %c0_1] : memref<256x128xf32, #tpu.memory_space<vmem>>, vector<256x128xf32>
    %c0_2 = arith.constant 0 : index
    %c0_3 = arith.constant 0 : index
    %4 = vector.load %arg3[%c0_2, %c0_3] : memref<256x48xbf16, #tpu.memory_space<vmem>>, vector<256x48xbf16>
    %c0_4 = arith.constant 0 : index
    %c0_5 = arith.constant 0 : index
    %5 = vector.load %arg4[%c0_4, %c0_5] : memref<48x128xbf16, #tpu.memory_space<vmem>>, vector<48x128xbf16>
    %cst = arith.constant dense<0.000000e+00> : vector<256x128xf32>
    %6 = tpu.matmul %4, %5, %cst {dimension_numbers = #tpu.dot_dimension_numbers<[1], [0], [0], [1], [0, 0, 1, 1], [], []>} : vector<256x48xbf16>, vector<48x128xbf16>, vector<256x128xf32> -> vector<256x128xf32>
    %7 = arith.addf %3, %6 : vector<256x128xf32>
    %c0_6 = arith.constant 0 : index
    %c0_7 = arith.constant 0 : index
    %8 = vector.load %arg8[%c0_6, %c0_7] : memref<256x128xf32, #tpu.memory_space<vmem>>, vector<256x128xf32>
    tpu.vector_store %arg8[%c0_6, %c0_7], %7 {strides = array<i32>} : memref<256x128xf32, #tpu.memory_space<vmem>>, vector<256x128xf32>,
    %c0_i32_8 = arith.constant 0 : i32
    %9 = arith.cmpi eq, %arg2, %c0_i32_8 : i32
    %10 = arith.extui %9 : i1 to i32
    %c0_i32_9 = arith.constant 0 : i32
    %11 = arith.cmpi ne, %10, %c0_i32_9 : i32
    scf.if %11 {
      %c0_10 = arith.constant 0 : index
      %c0_11 = arith.constant 0 : index
      %12 = vector.load %arg8[%c0_10, %c0_11] : memref<256x128xf32, #tpu.memory_space<vmem>>, vector<256x128xf32>
      %c0_12 = arith.constant 0 : index
      %c0_13 = arith.constant 0 : index
      %13 = vector.load %arg5[%c0_12, %c0_13] : memref<1x128xf32, #tpu.memory_space<vmem>>, vector<1x128xf32>
      %14 = vector.broadcast %13 : vector<1x128xf32> to vector<256x128xf32>
      %15 = arith.mulf %12, %14 : vector<256x128xf32>
      %c0_14 = arith.constant 0 : index
      %c0_15 = arith.constant 0 : index
      %16 = vector.load %arg6[%c0_14, %c0_15] : memref<1x128xf32, #tpu.memory_space<vmem>>, vector<1x128xf32>
      %17 = vector.broadcast %16 : vector<1x128xf32> to vector<256x128xf32>
      %18 = arith.addf %15, %17 : vector<256x128xf32>
      %cst_16 = arith.constant 0.000000e+00 : f32
      %19 = vector.broadcast %cst_16 : f32 to vector<256x128xf32>
      %20 = arith.cmpf oge, %18, %19 : vector<256x128xf32>
      %cst_17 = arith.constant 2.000000e-01 : f32
      %21 = vector.broadcast %cst_17 : f32 to vector<256x128xf32>
      %22 = arith.mulf %21, %18 : vector<256x128xf32>
      %23 = arith.select %20, %18, %22 : vector<256x128xi1>, vector<256x128xf32>
      %24 = arith.truncf %23 : vector<256x128xf32> to vector<256x128xbf16>
      %c0_18 = arith.constant 0 : index
      %c0_19 = arith.constant 0 : index
      %25 = vector.load %arg7[%c0_18, %c0_19] : memref<256x128xbf16, #tpu.memory_space<vmem>>, vector<256x128xbf16>
      tpu.vector_store %arg7[%c0_18, %c0_19], %24 {strides = array<i32>} : memref<256x128xbf16, #tpu.memory_space<vmem>>, vector<256x128xbf16>,
    } else {
    }
    return
  }
  func.func @transform_0(%arg0: i32, %arg1: i32, %arg2: i32) -> (i32, i32) {
    %c0_i32 = arith.constant 0 : i32
    return %arg0, %arg2 : i32, i32
  }
  func.func @transform_1(%arg0: i32, %arg1: i32, %arg2: i32) -> (i32, i32) {
    %c0_i32 = arith.constant 0 : i32
    return %arg2, %arg1 : i32, i32
  }
  func.func @transform_2(%arg0: i32, %arg1: i32, %arg2: i32) -> (i32, i32) {
    %c0_i32 = arith.constant 0 : i32
    %c0_i32_0 = arith.constant 0 : i32
    return %c0_i32, %arg1 : i32, i32
  }
  func.func @transform_3(%arg0: i32, %arg1: i32, %arg2: i32) -> (i32, i32) {
    %c0_i32 = arith.constant 0 : i32
    %c0_i32_0 = arith.constant 0 : i32
    return %c0_i32, %arg1 : i32, i32
  }
  func.func @transform_4(%arg0: i32, %arg1: i32, %arg2: i32) -> (i32, i32) {
    %c0_i32 = arith.constant 0 : i32
    return %arg0, %arg1 : i32, i32
  }
}

module attributes {stable_mosaic.version = 11 : i64} {
  func.func @_conv_mm_kernel(%arg0: i32, %arg1: i32, %arg2: i32, %arg3: memref<128x128xbf16, #tpu.memory_space<vmem>>, %arg4: memref<128x128xbf16, #tpu.memory_space<vmem>>, %arg5: memref<1x128xf32, #tpu.memory_space<vmem>>, %arg6: memref<1x128xf32, #tpu.memory_space<vmem>>, %arg7: memref<128x128xbf16, #tpu.memory_space<vmem>>, %arg8: memref<128x128xf32, #tpu.memory_space<vmem>>) attributes {dimension_semantics = [#tpu.dimension_semantics<parallel>, #tpu.dimension_semantics<parallel>, #tpu.dimension_semantics<arbitrary>], iteration_bounds = array<i64: 1, 1, 1>, scalar_prefetch = 0 : i64, scratch_operands = 1 : i64, tpu.core_type = #tpu.core_type<tc>, window_params = [{transform_indices = @transform_0, window_bounds = array<i64: 128, 128>}, {transform_indices = @transform_1, window_bounds = array<i64: 128, 128>}, {transform_indices = @transform_2, window_bounds = array<i64: 1, 128>}, {transform_indices = @transform_3, window_bounds = array<i64: 1, 128>}, {transform_indices = @transform_4, window_bounds = array<i64: 128, 128>}]} {
    %c0_i32 = arith.constant 0 : i32
    %0 = arith.cmpi eq, %arg2, %c0_i32 : i32
    %1 = arith.extui %0 : i1 to i32
    %c0_i32_0 = arith.constant 0 : i32
    %2 = arith.cmpi ne, %1, %c0_i32_0 : i32
    scf.if %2 {
      %cst_10 = arith.constant 0.000000e+00 : f32
      %12 = vector.broadcast %cst_10 : f32 to vector<128x128xf32>
      %c0_11 = arith.constant 0 : index
      %c0_12 = arith.constant 0 : index
      %13 = vector.load %arg8[%c0_11, %c0_12] : memref<128x128xf32, #tpu.memory_space<vmem>>, vector<128x128xf32>
      tpu.vector_store %arg8[%c0_11, %c0_12], %12 {strides = array<i32>} : memref<128x128xf32, #tpu.memory_space<vmem>>, vector<128x128xf32>,
    } else {
    }
    %c0 = arith.constant 0 : index
    %c0_1 = arith.constant 0 : index
    %3 = vector.load %arg8[%c0, %c0_1] : memref<128x128xf32, #tpu.memory_space<vmem>>, vector<128x128xf32>
    %c0_2 = arith.constant 0 : index
    %c0_3 = arith.constant 0 : index
    %4 = vector.load %arg3[%c0_2, %c0_3] : memref<128x128xbf16, #tpu.memory_space<vmem>>, vector<128x128xbf16>
    %c0_4 = arith.constant 0 : index
    %c0_5 = arith.constant 0 : index
    %5 = vector.load %arg4[%c0_4, %c0_5] : memref<128x128xbf16, #tpu.memory_space<vmem>>, vector<128x128xbf16>
    %cst = arith.constant dense<0.000000e+00> : vector<128x128xf32>
    %6 = tpu.matmul %4, %5, %cst {dimension_numbers = #tpu.dot_dimension_numbers<[1], [0], [0], [1], [0, 0, 1, 1], [], []>} : vector<128x128xbf16>, vector<128x128xbf16>, vector<128x128xf32> -> vector<128x128xf32>
    %7 = arith.addf %3, %6 : vector<128x128xf32>
    %c0_6 = arith.constant 0 : index
    %c0_7 = arith.constant 0 : index
    %8 = vector.load %arg8[%c0_6, %c0_7] : memref<128x128xf32, #tpu.memory_space<vmem>>, vector<128x128xf32>
    tpu.vector_store %arg8[%c0_6, %c0_7], %7 {strides = array<i32>} : memref<128x128xf32, #tpu.memory_space<vmem>>, vector<128x128xf32>,
    %c0_i32_8 = arith.constant 0 : i32
    %9 = arith.cmpi eq, %arg2, %c0_i32_8 : i32
    %10 = arith.extui %9 : i1 to i32
    %c0_i32_9 = arith.constant 0 : i32
    %11 = arith.cmpi ne, %10, %c0_i32_9 : i32
    scf.if %11 {
      %c0_10 = arith.constant 0 : index
      %c0_11 = arith.constant 0 : index
      %12 = vector.load %arg8[%c0_10, %c0_11] : memref<128x128xf32, #tpu.memory_space<vmem>>, vector<128x128xf32>
      %c0_12 = arith.constant 0 : index
      %c0_13 = arith.constant 0 : index
      %13 = vector.load %arg5[%c0_12, %c0_13] : memref<1x128xf32, #tpu.memory_space<vmem>>, vector<1x128xf32>
      %14 = vector.broadcast %13 : vector<1x128xf32> to vector<128x128xf32>
      %15 = arith.mulf %12, %14 : vector<128x128xf32>
      %c0_14 = arith.constant 0 : index
      %c0_15 = arith.constant 0 : index
      %16 = vector.load %arg6[%c0_14, %c0_15] : memref<1x128xf32, #tpu.memory_space<vmem>>, vector<1x128xf32>
      %17 = vector.broadcast %16 : vector<1x128xf32> to vector<128x128xf32>
      %18 = arith.addf %15, %17 : vector<128x128xf32>
      %cst_16 = arith.constant 0.000000e+00 : f32
      %19 = vector.broadcast %cst_16 : f32 to vector<128x128xf32>
      %20 = arith.cmpf oge, %18, %19 : vector<128x128xf32>
      %cst_17 = arith.constant 2.000000e-01 : f32
      %21 = vector.broadcast %cst_17 : f32 to vector<128x128xf32>
      %22 = arith.mulf %21, %18 : vector<128x128xf32>
      %23 = arith.select %20, %18, %22 : vector<128x128xi1>, vector<128x128xf32>
      %24 = arith.truncf %23 : vector<128x128xf32> to vector<128x128xbf16>
      %c0_18 = arith.constant 0 : index
      %c0_19 = arith.constant 0 : index
      %25 = vector.load %arg7[%c0_18, %c0_19] : memref<128x128xbf16, #tpu.memory_space<vmem>>, vector<128x128xbf16>
      tpu.vector_store %arg7[%c0_18, %c0_19], %24 {strides = array<i32>} : memref<128x128xbf16, #tpu.memory_space<vmem>>, vector<128x128xbf16>,
    } else {
    }
    return
  }
  func.func @transform_0(%arg0: i32, %arg1: i32, %arg2: i32) -> (i32, i32) {
    %c0_i32 = arith.constant 0 : i32
    return %arg0, %arg2 : i32, i32
  }
  func.func @transform_1(%arg0: i32, %arg1: i32, %arg2: i32) -> (i32, i32) {
    %c0_i32 = arith.constant 0 : i32
    return %arg2, %arg1 : i32, i32
  }
  func.func @transform_2(%arg0: i32, %arg1: i32, %arg2: i32) -> (i32, i32) {
    %c0_i32 = arith.constant 0 : i32
    %c0_i32_0 = arith.constant 0 : i32
    return %c0_i32, %arg1 : i32, i32
  }
  func.func @transform_3(%arg0: i32, %arg1: i32, %arg2: i32) -> (i32, i32) {
    %c0_i32 = arith.constant 0 : i32
    %c0_i32_0 = arith.constant 0 : i32
    return %c0_i32, %arg1 : i32, i32
  }
  func.func @transform_4(%arg0: i32, %arg1: i32, %arg2: i32) -> (i32, i32) {
    %c0_i32 = arith.constant 0 : i32
    return %arg0, %arg1 : i32, i32
  }
}

module attributes {stable_mosaic.version = 11 : i64} {
  func.func @_conv_mm_kernel(%arg0: i32, %arg1: i32, %arg2: i32, %arg3: memref<32x256xbf16, #tpu.memory_space<vmem>>, %arg4: memref<256x128xbf16, #tpu.memory_space<vmem>>, %arg5: memref<1x128xf32, #tpu.memory_space<vmem>>, %arg6: memref<1x128xf32, #tpu.memory_space<vmem>>, %arg7: memref<32x128xbf16, #tpu.memory_space<vmem>>, %arg8: memref<32x128xf32, #tpu.memory_space<vmem>>) attributes {dimension_semantics = [#tpu.dimension_semantics<parallel>, #tpu.dimension_semantics<parallel>, #tpu.dimension_semantics<arbitrary>], iteration_bounds = array<i64: 1, 1, 1>, scalar_prefetch = 0 : i64, scratch_operands = 1 : i64, tpu.core_type = #tpu.core_type<tc>, window_params = [{transform_indices = @transform_0, window_bounds = array<i64: 32, 256>}, {transform_indices = @transform_1, window_bounds = array<i64: 256, 128>}, {transform_indices = @transform_2, window_bounds = array<i64: 1, 128>}, {transform_indices = @transform_3, window_bounds = array<i64: 1, 128>}, {transform_indices = @transform_4, window_bounds = array<i64: 32, 128>}]} {
    %c0_i32 = arith.constant 0 : i32
    %0 = arith.cmpi eq, %arg2, %c0_i32 : i32
    %1 = arith.extui %0 : i1 to i32
    %c0_i32_0 = arith.constant 0 : i32
    %2 = arith.cmpi ne, %1, %c0_i32_0 : i32
    scf.if %2 {
      %cst_10 = arith.constant 0.000000e+00 : f32
      %12 = vector.broadcast %cst_10 : f32 to vector<32x128xf32>
      %c0_11 = arith.constant 0 : index
      %c0_12 = arith.constant 0 : index
      %13 = vector.load %arg8[%c0_11, %c0_12] : memref<32x128xf32, #tpu.memory_space<vmem>>, vector<32x128xf32>
      tpu.vector_store %arg8[%c0_11, %c0_12], %12 {strides = array<i32>} : memref<32x128xf32, #tpu.memory_space<vmem>>, vector<32x128xf32>,
    } else {
    }
    %c0 = arith.constant 0 : index
    %c0_1 = arith.constant 0 : index
    %3 = vector.load %arg8[%c0, %c0_1] : memref<32x128xf32, #tpu.memory_space<vmem>>, vector<32x128xf32>
    %c0_2 = arith.constant 0 : index
    %c0_3 = arith.constant 0 : index
    %4 = vector.load %arg3[%c0_2, %c0_3] : memref<32x256xbf16, #tpu.memory_space<vmem>>, vector<32x256xbf16>
    %c0_4 = arith.constant 0 : index
    %c0_5 = arith.constant 0 : index
    %5 = vector.load %arg4[%c0_4, %c0_5] : memref<256x128xbf16, #tpu.memory_space<vmem>>, vector<256x128xbf16>
    %cst = arith.constant dense<0.000000e+00> : vector<32x128xf32>
    %6 = tpu.matmul %4, %5, %cst {dimension_numbers = #tpu.dot_dimension_numbers<[1], [0], [0], [1], [0, 0, 1, 1], [], []>} : vector<32x256xbf16>, vector<256x128xbf16>, vector<32x128xf32> -> vector<32x128xf32>
    %7 = arith.addf %3, %6 : vector<32x128xf32>
    %c0_6 = arith.constant 0 : index
    %c0_7 = arith.constant 0 : index
    %8 = vector.load %arg8[%c0_6, %c0_7] : memref<32x128xf32, #tpu.memory_space<vmem>>, vector<32x128xf32>
    tpu.vector_store %arg8[%c0_6, %c0_7], %7 {strides = array<i32>} : memref<32x128xf32, #tpu.memory_space<vmem>>, vector<32x128xf32>,
    %c0_i32_8 = arith.constant 0 : i32
    %9 = arith.cmpi eq, %arg2, %c0_i32_8 : i32
    %10 = arith.extui %9 : i1 to i32
    %c0_i32_9 = arith.constant 0 : i32
    %11 = arith.cmpi ne, %10, %c0_i32_9 : i32
    scf.if %11 {
      %c0_10 = arith.constant 0 : index
      %c0_11 = arith.constant 0 : index
      %12 = vector.load %arg8[%c0_10, %c0_11] : memref<32x128xf32, #tpu.memory_space<vmem>>, vector<32x128xf32>
      %c0_12 = arith.constant 0 : index
      %c0_13 = arith.constant 0 : index
      %13 = vector.load %arg5[%c0_12, %c0_13] : memref<1x128xf32, #tpu.memory_space<vmem>>, vector<1x128xf32>
      %14 = vector.broadcast %13 : vector<1x128xf32> to vector<32x128xf32>
      %15 = arith.mulf %12, %14 : vector<32x128xf32>
      %c0_14 = arith.constant 0 : index
      %c0_15 = arith.constant 0 : index
      %16 = vector.load %arg6[%c0_14, %c0_15] : memref<1x128xf32, #tpu.memory_space<vmem>>, vector<1x128xf32>
      %17 = vector.broadcast %16 : vector<1x128xf32> to vector<32x128xf32>
      %18 = arith.addf %15, %17 : vector<32x128xf32>
      %cst_16 = arith.constant 0.000000e+00 : f32
      %19 = vector.broadcast %cst_16 : f32 to vector<32x128xf32>
      %20 = arith.cmpf oge, %18, %19 : vector<32x128xf32>
      %cst_17 = arith.constant 2.000000e-01 : f32
      %21 = vector.broadcast %cst_17 : f32 to vector<32x128xf32>
      %22 = arith.mulf %21, %18 : vector<32x128xf32>
      %23 = arith.select %20, %18, %22 : vector<32x128xi1>, vector<32x128xf32>
      %24 = arith.truncf %23 : vector<32x128xf32> to vector<32x128xbf16>
      %c0_18 = arith.constant 0 : index
      %c0_19 = arith.constant 0 : index
      %25 = vector.load %arg7[%c0_18, %c0_19] : memref<32x128xbf16, #tpu.memory_space<vmem>>, vector<32x128xbf16>
      tpu.vector_store %arg7[%c0_18, %c0_19], %24 {strides = array<i32>} : memref<32x128xbf16, #tpu.memory_space<vmem>>, vector<32x128xbf16>,
    } else {
    }
    return
  }
  func.func @transform_0(%arg0: i32, %arg1: i32, %arg2: i32) -> (i32, i32) {
    %c0_i32 = arith.constant 0 : i32
    return %arg0, %arg2 : i32, i32
  }
  func.func @transform_1(%arg0: i32, %arg1: i32, %arg2: i32) -> (i32, i32) {
    %c0_i32 = arith.constant 0 : i32
    return %arg2, %arg1 : i32, i32
  }
  func.func @transform_2(%arg0: i32, %arg1: i32, %arg2: i32) -> (i32, i32) {
    %c0_i32 = arith.constant 0 : i32
    %c0_i32_0 = arith.constant 0 : i32
    return %c0_i32, %arg1 : i32, i32
  }
  func.func @transform_3(%arg0: i32, %arg1: i32, %arg2: i32) -> (i32, i32) {
    %c0_i32 = arith.constant 0 : i32
    %c0_i32_0 = arith.constant 0 : i32
    return %c0_i32, %arg1 : i32, i32
  }
  func.func @transform_4(%arg0: i32, %arg1: i32, %arg2: i32) -> (i32, i32) {
    %c0_i32 = arith.constant 0 : i32
    return %arg0, %arg1 : i32, i32
  }
}

module attributes {stable_mosaic.version = 11 : i64} {
  func.func @_conv_mm_kernel(%arg0: i32, %arg1: i32, %arg2: i32, %arg3: memref<32x512xbf16, #tpu.memory_space<vmem>>, %arg4: memref<512x128xbf16, #tpu.memory_space<vmem>>, %arg5: memref<1x128xf32, #tpu.memory_space<vmem>>, %arg6: memref<1x128xf32, #tpu.memory_space<vmem>>, %arg7: memref<32x128xbf16, #tpu.memory_space<vmem>>, %arg8: memref<32x128xf32, #tpu.memory_space<vmem>>) attributes {dimension_semantics = [#tpu.dimension_semantics<parallel>, #tpu.dimension_semantics<parallel>, #tpu.dimension_semantics<arbitrary>], iteration_bounds = array<i64: 1, 1, 1>, scalar_prefetch = 0 : i64, scratch_operands = 1 : i64, tpu.core_type = #tpu.core_type<tc>, window_params = [{transform_indices = @transform_0, window_bounds = array<i64: 32, 512>}, {transform_indices = @transform_1, window_bounds = array<i64: 512, 128>}, {transform_indices = @transform_2, window_bounds = array<i64: 1, 128>}, {transform_indices = @transform_3, window_bounds = array<i64: 1, 128>}, {transform_indices = @transform_4, window_bounds = array<i64: 32, 128>}]} {
    %c0_i32 = arith.constant 0 : i32
    %0 = arith.cmpi eq, %arg2, %c0_i32 : i32
    %1 = arith.extui %0 : i1 to i32
    %c0_i32_0 = arith.constant 0 : i32
    %2 = arith.cmpi ne, %1, %c0_i32_0 : i32
    scf.if %2 {
      %cst_10 = arith.constant 0.000000e+00 : f32
      %12 = vector.broadcast %cst_10 : f32 to vector<32x128xf32>
      %c0_11 = arith.constant 0 : index
      %c0_12 = arith.constant 0 : index
      %13 = vector.load %arg8[%c0_11, %c0_12] : memref<32x128xf32, #tpu.memory_space<vmem>>, vector<32x128xf32>
      tpu.vector_store %arg8[%c0_11, %c0_12], %12 {strides = array<i32>} : memref<32x128xf32, #tpu.memory_space<vmem>>, vector<32x128xf32>,
    } else {
    }
    %c0 = arith.constant 0 : index
    %c0_1 = arith.constant 0 : index
    %3 = vector.load %arg8[%c0, %c0_1] : memref<32x128xf32, #tpu.memory_space<vmem>>, vector<32x128xf32>
    %c0_2 = arith.constant 0 : index
    %c0_3 = arith.constant 0 : index
    %4 = vector.load %arg3[%c0_2, %c0_3] : memref<32x512xbf16, #tpu.memory_space<vmem>>, vector<32x512xbf16>
    %c0_4 = arith.constant 0 : index
    %c0_5 = arith.constant 0 : index
    %5 = vector.load %arg4[%c0_4, %c0_5] : memref<512x128xbf16, #tpu.memory_space<vmem>>, vector<512x128xbf16>
    %cst = arith.constant dense<0.000000e+00> : vector<32x128xf32>
    %6 = tpu.matmul %4, %5, %cst {dimension_numbers = #tpu.dot_dimension_numbers<[1], [0], [0], [1], [0, 0, 1, 1], [], []>} : vector<32x512xbf16>, vector<512x128xbf16>, vector<32x128xf32> -> vector<32x128xf32>
    %7 = arith.addf %3, %6 : vector<32x128xf32>
    %c0_6 = arith.constant 0 : index
    %c0_7 = arith.constant 0 : index
    %8 = vector.load %arg8[%c0_6, %c0_7] : memref<32x128xf32, #tpu.memory_space<vmem>>, vector<32x128xf32>
    tpu.vector_store %arg8[%c0_6, %c0_7], %7 {strides = array<i32>} : memref<32x128xf32, #tpu.memory_space<vmem>>, vector<32x128xf32>,
    %c0_i32_8 = arith.constant 0 : i32
    %9 = arith.cmpi eq, %arg2, %c0_i32_8 : i32
    %10 = arith.extui %9 : i1 to i32
    %c0_i32_9 = arith.constant 0 : i32
    %11 = arith.cmpi ne, %10, %c0_i32_9 : i32
    scf.if %11 {
      %c0_10 = arith.constant 0 : index
      %c0_11 = arith.constant 0 : index
      %12 = vector.load %arg8[%c0_10, %c0_11] : memref<32x128xf32, #tpu.memory_space<vmem>>, vector<32x128xf32>
      %c0_12 = arith.constant 0 : index
      %c0_13 = arith.constant 0 : index
      %13 = vector.load %arg5[%c0_12, %c0_13] : memref<1x128xf32, #tpu.memory_space<vmem>>, vector<1x128xf32>
      %14 = vector.broadcast %13 : vector<1x128xf32> to vector<32x128xf32>
      %15 = arith.mulf %12, %14 : vector<32x128xf32>
      %c0_14 = arith.constant 0 : index
      %c0_15 = arith.constant 0 : index
      %16 = vector.load %arg6[%c0_14, %c0_15] : memref<1x128xf32, #tpu.memory_space<vmem>>, vector<1x128xf32>
      %17 = vector.broadcast %16 : vector<1x128xf32> to vector<32x128xf32>
      %18 = arith.addf %15, %17 : vector<32x128xf32>
      %cst_16 = arith.constant 0.000000e+00 : f32
      %19 = vector.broadcast %cst_16 : f32 to vector<32x128xf32>
      %20 = arith.cmpf oge, %18, %19 : vector<32x128xf32>
      %cst_17 = arith.constant 2.000000e-01 : f32
      %21 = vector.broadcast %cst_17 : f32 to vector<32x128xf32>
      %22 = arith.mulf %21, %18 : vector<32x128xf32>
      %23 = arith.select %20, %18, %22 : vector<32x128xi1>, vector<32x128xf32>
      %24 = arith.truncf %23 : vector<32x128xf32> to vector<32x128xbf16>
      %c0_18 = arith.constant 0 : index
      %c0_19 = arith.constant 0 : index
      %25 = vector.load %arg7[%c0_18, %c0_19] : memref<32x128xbf16, #tpu.memory_space<vmem>>, vector<32x128xbf16>
      tpu.vector_store %arg7[%c0_18, %c0_19], %24 {strides = array<i32>} : memref<32x128xbf16, #tpu.memory_space<vmem>>, vector<32x128xbf16>,
    } else {
    }
    return
  }
  func.func @transform_0(%arg0: i32, %arg1: i32, %arg2: i32) -> (i32, i32) {
    %c0_i32 = arith.constant 0 : i32
    return %arg0, %arg2 : i32, i32
  }
  func.func @transform_1(%arg0: i32, %arg1: i32, %arg2: i32) -> (i32, i32) {
    %c0_i32 = arith.constant 0 : i32
    return %arg2, %arg1 : i32, i32
  }
  func.func @transform_2(%arg0: i32, %arg1: i32, %arg2: i32) -> (i32, i32) {
    %c0_i32 = arith.constant 0 : i32
    %c0_i32_0 = arith.constant 0 : i32
    return %c0_i32, %arg1 : i32, i32
  }
  func.func @transform_3(%arg0: i32, %arg1: i32, %arg2: i32) -> (i32, i32) {
    %c0_i32 = arith.constant 0 : i32
    %c0_i32_0 = arith.constant 0 : i32
    return %c0_i32, %arg1 : i32, i32
  }
  func.func @transform_4(%arg0: i32, %arg1: i32, %arg2: i32) -> (i32, i32) {
    %c0_i32 = arith.constant 0 : i32
    return %arg0, %arg1 : i32, i32
  }
}

module attributes {stable_mosaic.version = 11 : i64} {
  func.func @_conv_mm_kernel(%arg0: i32, %arg1: i32, %arg2: i32, %arg3: memref<16x512xbf16, #tpu.memory_space<vmem>>, %arg4: memref<512x128xbf16, #tpu.memory_space<vmem>>, %arg5: memref<1x128xf32, #tpu.memory_space<vmem>>, %arg6: memref<1x128xf32, #tpu.memory_space<vmem>>, %arg7: memref<16x128xf32, #tpu.memory_space<vmem>>, %arg8: memref<16x128xf32, #tpu.memory_space<vmem>>) attributes {dimension_semantics = [#tpu.dimension_semantics<parallel>, #tpu.dimension_semantics<parallel>, #tpu.dimension_semantics<arbitrary>], iteration_bounds = array<i64: 1, 1, 2>, scalar_prefetch = 0 : i64, scratch_operands = 1 : i64, tpu.core_type = #tpu.core_type<tc>, window_params = [{transform_indices = @transform_0, window_bounds = array<i64: 16, 512>}, {transform_indices = @transform_1, window_bounds = array<i64: 512, 128>}, {transform_indices = @transform_2, window_bounds = array<i64: 1, 128>}, {transform_indices = @transform_3, window_bounds = array<i64: 1, 128>}, {transform_indices = @transform_4, window_bounds = array<i64: 16, 128>}]} {
    %c0_i32 = arith.constant 0 : i32
    %0 = arith.cmpi eq, %arg2, %c0_i32 : i32
    %1 = arith.extui %0 : i1 to i32
    %c0_i32_0 = arith.constant 0 : i32
    %2 = arith.cmpi ne, %1, %c0_i32_0 : i32
    scf.if %2 {
      %cst_9 = arith.constant 0.000000e+00 : f32
      %12 = vector.broadcast %cst_9 : f32 to vector<16x128xf32>
      %c0_10 = arith.constant 0 : index
      %c0_11 = arith.constant 0 : index
      %13 = vector.load %arg8[%c0_10, %c0_11] : memref<16x128xf32, #tpu.memory_space<vmem>>, vector<16x128xf32>
      tpu.vector_store %arg8[%c0_10, %c0_11], %12 {strides = array<i32>} : memref<16x128xf32, #tpu.memory_space<vmem>>, vector<16x128xf32>,
    } else {
    }
    %c0 = arith.constant 0 : index
    %c0_1 = arith.constant 0 : index
    %3 = vector.load %arg8[%c0, %c0_1] : memref<16x128xf32, #tpu.memory_space<vmem>>, vector<16x128xf32>
    %c0_2 = arith.constant 0 : index
    %c0_3 = arith.constant 0 : index
    %4 = vector.load %arg3[%c0_2, %c0_3] : memref<16x512xbf16, #tpu.memory_space<vmem>>, vector<16x512xbf16>
    %c0_4 = arith.constant 0 : index
    %c0_5 = arith.constant 0 : index
    %5 = vector.load %arg4[%c0_4, %c0_5] : memref<512x128xbf16, #tpu.memory_space<vmem>>, vector<512x128xbf16>
    %cst = arith.constant dense<0.000000e+00> : vector<16x128xf32>
    %6 = tpu.matmul %4, %5, %cst {dimension_numbers = #tpu.dot_dimension_numbers<[1], [0], [0], [1], [0, 0, 1, 1], [], []>} : vector<16x512xbf16>, vector<512x128xbf16>, vector<16x128xf32> -> vector<16x128xf32>
    %7 = arith.addf %3, %6 : vector<16x128xf32>
    %c0_6 = arith.constant 0 : index
    %c0_7 = arith.constant 0 : index
    %8 = vector.load %arg8[%c0_6, %c0_7] : memref<16x128xf32, #tpu.memory_space<vmem>>, vector<16x128xf32>
    tpu.vector_store %arg8[%c0_6, %c0_7], %7 {strides = array<i32>} : memref<16x128xf32, #tpu.memory_space<vmem>>, vector<16x128xf32>,
    %c1_i32 = arith.constant 1 : i32
    %9 = arith.cmpi eq, %arg2, %c1_i32 : i32
    %10 = arith.extui %9 : i1 to i32
    %c0_i32_8 = arith.constant 0 : i32
    %11 = arith.cmpi ne, %10, %c0_i32_8 : i32
    scf.if %11 {
      %c0_9 = arith.constant 0 : index
      %c0_10 = arith.constant 0 : index
      %12 = vector.load %arg8[%c0_9, %c0_10] : memref<16x128xf32, #tpu.memory_space<vmem>>, vector<16x128xf32>
      %c0_11 = arith.constant 0 : index
      %c0_12 = arith.constant 0 : index
      %13 = vector.load %arg5[%c0_11, %c0_12] : memref<1x128xf32, #tpu.memory_space<vmem>>, vector<1x128xf32>
      %14 = vector.broadcast %13 : vector<1x128xf32> to vector<16x128xf32>
      %15 = arith.mulf %12, %14 : vector<16x128xf32>
      %c0_13 = arith.constant 0 : index
      %c0_14 = arith.constant 0 : index
      %16 = vector.load %arg6[%c0_13, %c0_14] : memref<1x128xf32, #tpu.memory_space<vmem>>, vector<1x128xf32>
      %17 = vector.broadcast %16 : vector<1x128xf32> to vector<16x128xf32>
      %18 = arith.addf %15, %17 : vector<16x128xf32>
      %c0_15 = arith.constant 0 : index
      %c0_16 = arith.constant 0 : index
      %19 = vector.load %arg7[%c0_15, %c0_16] : memref<16x128xf32, #tpu.memory_space<vmem>>, vector<16x128xf32>
      tpu.vector_store %arg7[%c0_15, %c0_16], %18 {strides = array<i32>} : memref<16x128xf32, #tpu.memory_space<vmem>>, vector<16x128xf32>,
    } else {
    }
    return
  }
  func.func @transform_0(%arg0: i32, %arg1: i32, %arg2: i32) -> (i32, i32) {
    %c0_i32 = arith.constant 0 : i32
    return %arg0, %arg2 : i32, i32
  }
  func.func @transform_1(%arg0: i32, %arg1: i32, %arg2: i32) -> (i32, i32) {
    %c0_i32 = arith.constant 0 : i32
    return %arg2, %arg1 : i32, i32
  }
  func.func @transform_2(%arg0: i32, %arg1: i32, %arg2: i32) -> (i32, i32) {
    %c0_i32 = arith.constant 0 : i32
    %c0_i32_0 = arith.constant 0 : i32
    return %c0_i32, %arg1 : i32, i32
  }
  func.func @transform_3(%arg0: i32, %arg1: i32, %arg2: i32) -> (i32, i32) {
    %c0_i32 = arith.constant 0 : i32
    %c0_i32_0 = arith.constant 0 : i32
    return %c0_i32, %arg1 : i32, i32
  }
  func.func @transform_4(%arg0: i32, %arg1: i32, %arg2: i32) -> (i32, i32) {
    %c0_i32 = arith.constant 0 : i32
    return %arg0, %arg1 : i32, i32
  }
}

</mosaic_0001>

<bundles_post_ra>
// kernel: _lambda_.5
= control target key start
LH: loop header
LB: loop body
LE: loop exit
PB: predicated region body
PF: predicated region fallthrough
CT: control target
= control target key end

     0   :  { %9 = vsyncpa [#allocation4], 0  ;;  %s2349_s0 = inlined_call_operand.hbm [shape: bf16[512,48], index: 0, kind: input, shape index: {}]   ;;  %s2350_s1 = inlined_call_operand.hbm [shape: bf16[48,128], index: 1, kind: input, shape index: {}]   ;;  %s2351_s2 = inlined_call_operand.hbm [shape: f32[1,128], index: 2, kind: input, shape index: {}]   ;;  %s2352_s3 = inlined_call_operand.hbm [shape: f32[1,128], index: 3, kind: input, shape index: {}]   ;;  %s2353_s4 = inlined_call_operand.hbm [shape: bf16[512,128], index: 4, kind: output, shape index: {}]  }
   0x1   :  { %11 = vsyncpa [#allocation4 + $0x1], 0 }
   0x2   :  { %12 = vsyncpa [#allocation7], 0 }
   0x3   :  { %13 = vsyncpa [#allocation10], 0 }
   0x4   :  { %14 = vsyncpa [#allocation5], 0 }
   0x5   :  { %16 = vsyncpa [#allocation5 + $0x1], 0  ;;  %s1934_s15 = smov 0   ;;  %s1936_s16 = smov 0  }
   0x6   :  { %s1938_s17 = smov 0   ;;  %s1940_s18 = smov 0  }
   0x7   :  { %s1942_s19 = smov 0   ;;  %s1944_s20 = smov 0  }
   0x8 LB: > { %s1296_s21 = sadd.s32 4294967295, %s1898_s20   ;;  %s1297_s22 = sadd.s32 4294967294, %s1898_s20   ;;  %s1898_s20 = sphi %s1944_s20, %s22_s20   ;;  %s1894_s19 = sphi %s1942_s19, %s2380_s19   ;;  %s1890_s18 = sphi %s1940_s18, %s2379_s18   ;;  %s1886_s17 = sphi %s1938_s17, %s2378_s17   ;;  %s1882_s16 = sphi %s1936_s16, %s2377_s16   ;;  %s1878_s15 = sphi %s1934_s15, %s2376_s15  }
   0x9   : > { %p63_p0 = scmp.ne.s32.totalorder %s1882_s16, %s1878_s15  ;;  %p1968_p1 = scmp.eq.s32.totalorder %s1296_s21, 0 }
   0xa   : > { %p1972_p2 = scmp.eq.s32.totalorder %s1296_s21, 1  ;;  %p175_p3 = scmp.eq.s32.totalorder %s1297_s22, 1 }
   0xb   : > { %s2359_s23 = scalar_select %p1968_p1, 1, 0 }
   0xc   : > { %s2360_s24 = scalar_select %p1972_p2, 1, 0 }
   0xd   : > { %p1978_p4 = por %p1968_p1, %p63_p0  ;;  %p1298_p5 = scmp.ge.s32.totalorder %s1898_s20, 1 }
   0xe   : > { %p1983_p6 = por %p175_p3, %p63_p0  ;;  %p182_p7 = scmp.lt.s32.totalorder %s1898_s20, 3 }
   0xf   : > { %s2361_s25 = scalar_select %p1978_p4, 1, 0 }
  0x10   : > { %s2362_s26 = scalar_select %p1983_p6, 1, 0 }
  0x11   : > { %p1988_p8 = pnand %p1298_p5, %p182_p7  ;;  %s1900_s28 = smov [#allocation6]  }
  0x12   : > { %2363 = sst [smem:[#allocation16_spill]] %s2362_s26  ;;  %s198_s29 = sshll.u32 %s1900_s28, 4  ;;  %s1992_s29 = int_to_ptr.vmem [resolvable:$true] %s198_s29 }
  0x13   : > { %s2364_s27 = scalar_select %p1988_p8, 1, 0 }
  0x14   : > { %p1594_p9 = pneg %p1988_p8  ;;  %s1901_s5 = smov [#allocation8]  }
  0x15   : > { %s214_s6 = sshll.u32 %s1901_s5, 4  ;;  %s1902_s7 = smov [#allocation9]   ;;  %s2003_s6 = int_to_ptr.vmem [resolvable:$true] %s214_s6 }
  0x16   : > { %p1999_p11 = pnand %p1594_p9, %p1968_p1  ;;  %s2005_s8 = sshll.u32 %s1902_s7, 4  ;;  %s228_s8 = int_to_ptr.vmem [resolvable:$true] %s2005_s8 }
  0x17   : > { %s1694_s11 = scalar_lea.hbm %s2350_s1, 384 }
  0x18   : > { %p1695_p12 = scmp.ne.s32.totalorder %s2350_s1, %s1694_s11  ;;  %p2015_p13 = pneg %p1999_p11 }
  0x19   : > { %p1701_p5 = scmp.lt.u32.totalorder %s1694_s11, %s2350_s1 }
  0x1a   : > { %p1697_p0 = pnand %p2015_p13, %p1695_p12 }
  0x1c   : > { %p1698_p3 = pneg %p1697_p0 }
  0x1e   : > { %p1703_p7 = pnand %p1701_p5, %p1698_p3 }
  0x20   : > { %1706 = shalt.err (!%p1703_p7)
}
  0x21   : > { %s1707_s28 = scalar_lea.vmem %s1992_s29, 384  ;;  %p1715_p1 = scmp.lt.s32.totalorder %s1992_s29, %s1992_s29 }
  0x22   : > { %p1708_p9 = scmp.ne.s32.totalorder %s1992_s29, %s1707_s28  ;;  %p1716_p4 = scmp.lt.s32.totalorder %s1707_s28, %s1707_s28 }
  0x24   : > { %p1710_p10 = pnand %p1708_p9, %p2015_p13  ;;  %p1717_p12 = por %p1716_p4, %p1715_p1 }
  0x26   : > { %p1711_p6 = pneg %p1710_p10 }
  0x28   : > { %p1718_p0 = pnand %p1717_p12, %p1711_p6 }
  0x2a   : > { %1721 = shalt.err (!%p1718_p0)
}
  0x2b   : > { %s1903_s5 = smov 64   ;;  %s1904_s7 = smov 4  }
  0x2c   : > { %1597 = dma.hbm_to_vmem [thread:$0]  (!%p1999_p11), %s2350_s1, 384, %s1992_s29, [#allocation7], %s1903_s5, %s1903_s5, %s1904_s7  }
  0x2d   : > { %s1722_s13 = scalar_lea.hbm %s2351_s2, 16 }
  0x2e   : > { %p1723_p1 = scmp.ne.s32.totalorder %s2351_s2, %s1722_s13  ;;  %p1729_p10 = scmp.lt.u32.totalorder %s1722_s13, %s2351_s2 }
  0x30   : > { %p1725_p4 = pnand %p1723_p1, %p2015_p13 }
  0x32   : > { %p1726_p6 = pneg %p1725_p4 }
  0x34   : > { %p1731_p3 = pnand %p1729_p10, %p1726_p6 }
  0x36   : > { %1734 = shalt.err (!%p1731_p3)
}
  0x37   : > { %s1735_s29 = scalar_lea.vmem %s2003_s6, 16  ;;  %s1742_s9 = scalar_lea.vmem %s2003_s6, 32 }
  0x38   : > { %p1736_p5 = scmp.ne.s32.totalorder %s2003_s6, %s1735_s29  ;;  %p1743_p12 = scmp.lt.s32.totalorder %s2003_s6, %s2003_s6 }
  0x39   : > { %p1744_p0 = scmp.lt.s32.totalorder %s1742_s9, %s1735_s29 }
  0x3a   : > { %p1738_p7 = pnand %p1736_p5, %p2015_p13 }
  0x3b   : > { %p1745_p1 = por %p1744_p0, %p1743_p12 }
  0x3c   : > { %p1739_p9 = pneg %p1738_p7 }
  0x3e   : > { %p1746_p4 = pnand %p1745_p1, %p1739_p9 }
  0x40   : > { %1749 = shalt.err (!%p1746_p4)
}
  0x41   : > { %1600 = dma.hbm_to_vmem [thread:$0]  (!%p1999_p11), %s2351_s2, 16, %s2003_s6, [#allocation7]  }
  0x42   : > { %s1750_s13 = scalar_lea.hbm %s2352_s3, 16 }
  0x43   : > { %p1751_p6 = scmp.ne.s32.totalorder %s2352_s3, %s1750_s13  ;;  %p1757_p5 = scmp.lt.u32.totalorder %s1750_s13, %s2352_s3 }
  0x45   : > { %p1753_p10 = pnand %p1751_p6, %p2015_p13 }
  0x47   : > { %p1754_p3 = pneg %p1753_p10 }
  0x49   : > { %p1759_p7 = pnand %p1757_p5, %p1754_p3 }
  0x4b   : > { %1762 = shalt.err (!%p1759_p7)
}
  0x4c   : > { %s1763_s9 = scalar_lea.vmem %s228_s8, 16  ;;  %s1770_s6 = scalar_lea.vmem %s228_s8, 32 }
  0x4d   : > { %p1764_p9 = scmp.ne.s32.totalorder %s228_s8, %s1763_s9  ;;  %p1771_p1 = scmp.lt.s32.totalorder %s228_s8, %s228_s8 }
  0x4e   : > { %p1772_p4 = scmp.lt.s32.totalorder %s1770_s6, %s1763_s9 }
  0x4f   : > { %p1766_p12 = pnand %p1764_p9, %p2015_p13 }
  0x50   : > { %p1773_p8 = por %p1772_p4, %p1771_p1 }
  0x51   : > { %p1767_p0 = pneg %p1766_p12 }
  0x53   : > { %p1774_p2 = pnand %p1773_p8, %p1767_p0 }
  0x55   : > { %1777 = shalt.err (!%p1774_p2)
}
  0x56   : > { %1603 = dma.hbm_to_vmem [thread:$0]  (!%p1999_p11), %s2352_s3, 16, %s228_s8, [#allocation10]  }
  0x57   : > { %s50_s14 = sadd.s32 1, %s1886_s17  ;;  %s41_s11 = sadd.s32 1, %s1894_s19 }
  0x58   : > { %p57_p2 = scmp.ne.s32.totalorder %s1886_s17, %s1882_s16  ;;  %p43_p8 = scmp.ge.s32.totalorder %s41_s11, 2 }
  0x59   : > { %p58_p13 = scmp.eq.s32.totalorder %s1898_s20, 0  ;;  %p2367_p6 = scmp.ne.s32.totalorder %s2360_s24, 0 }
  0x5a   : > { %p1615_p3 = scmp.lt.s32.totalorder %s1898_s20, 2  ;;  %s2382_s11 = smov (%p43_p8, %s41_s11), 0 }
  0x5b   : > { %p2089_p10 = por %p2367_p6, %p57_p2  ;;  %p59_p5 = por %p58_p13, %p57_p2 }
  0x5c   : > { %s238_s12 = sand.u32 1, %s1886_s17   ;;  %s45_s13 = ssub.s32 %s1894_s19, %s2382_s11 }
  0x5d   : > { %p48_p7 = scmp.eq.s32.totalorder %s45_s13, 0  ;;  %s1303_s8 = sshll.u32 %s238_s12, 7 }
  0x5e   : > { %s1386_s21 = sshll.u32 %s1894_s19, 11  ;;  %s242_s9 = scalar_lea.vmem [#allocation3], %s1303_s8 }
  0x5f   : > { %s2101_s22 = scalar_select %p48_p7, %s1886_s17, %s50_s14  }
  0x60   : > { %s2106_s24 = scalar_lea.hbm %s2349_s0, %s1386_s21  ;;  %s250_s6 = sshll.u32 %s242_s9, 4  ;;  %s2108_s6 = int_to_ptr.vmem [resolvable:$true] %s250_s6 }
  0x61   : > { %p2112_p11 = pnand %p1615_p3, %p59_p5  ;;  %s2116_s10 = scalar_lea.sflag [#allocation4], %s238_s12 }
  0x62   : > { %s1778_s14 = scalar_lea.hbm %s2106_s24, 2048  ;;  %s1783_s21 = scalar_lea.hbm %s2349_s0, 4096 }
  0x63   : > { %p1779_p9 = scmp.ne.s32.totalorder %s2106_s24, %s1778_s14  ;;  %p1780_p12 = pneg %p2112_p11 }
  0x64   : > { %p1784_p4 = scmp.lt.u32.totalorder %s2106_s24, %s2349_s0  ;;  %p1785_p2 = scmp.lt.u32.totalorder %s1783_s21, %s1778_s14 }
  0x65   : > { %p1781_p0 = pnand %p1780_p12, %p1779_p9  ;;  %p1787_p13 = scmp.lt.u32.totalorder %s1778_s14, %s2106_s24 }
  0x66   : > { %p1786_p8 = por %p1785_p2, %p1784_p4 }
  0x67   : > { %p1782_p1 = pneg %p1781_p0 }
  0x68   : > { %p1788_p6 = por %p1787_p13, %p1786_p8 }
  0x6a   : > { %p1789_p3 = pnand %p1788_p6, %p1782_p1 }
  0x6c   : > { %1792 = shalt.err (!%p1789_p3)
}
  0x6d   : > { %s1793_s12 = scalar_lea.vmem %s2108_s6, 2048  ;;  %s1905_s9 = smov [#allocation3]  }
  0x6e   : > { %p1794_p5 = scmp.ne.s32.totalorder %s2108_s6, %s1793_s12  ;;  %s1798_s13 = sshll.u32 %s1905_s9, 4  ;;  %s1799_s13 = int_to_ptr.vmem [resolvable:$false] %s1798_s13 }
  0x6f   : > { %s1800_s8 = scalar_lea.vmem %s1799_s13, 4096  ;;  %p1801_p0 = scmp.lt.s32.totalorder %s2108_s6, %s1799_s13 }
  0x70   : > { %p1796_p7 = pnand %p1794_p5, %p1780_p12  ;;  %p1802_p4 = scmp.lt.s32.totalorder %s1800_s8, %s1793_s12 }
  0x72   : > { %p1797_p9 = pneg %p1796_p7  ;;  %p1803_p2 = por %p1802_p4, %p1801_p0 }
  0x74   : > { %p1804_p8 = pnand %p1803_p2, %p1797_p9 }
  0x76   : > { %1807 = shalt.err (!%p1804_p8)
}
  0x77   : > { %1607 = dma.hbm_to_vmem [thread:$0]  (!%p2112_p11), %s2106_s24, 2048, %s2108_s6, %s2116_s10, %s1903_s5, %s1903_s5, %s1904_s7  }
  0x78   : > { %p2370_p12 = scmp.ne.s32.totalorder %s2364_s27, 0 }
  0x79   : > { %s2150_s14 = sand.u32 (!%p2370_p12), 1, %s1882_s16   ;;  %p2371_p1 = scmp.ne.s32.totalorder (!%p2370_p12), %s2361_s25, 0 }
  0x7a   : > { %262 = sbr.rel (%p2370_p12) target bundleno = 424 (0x1a8), region = 36  ;;  %s1307_s21 = sshll.u32 (!%p2370_p12), %s2150_s14, 7 }
  0x7b   : > { %s265_s28 = scalar_lea.sflag (!%p2370_p12), [#allocation4], %s2150_s14  ;;  %s2156_s26 = scalar_lea.vmem (!%p2370_p12), [#allocation3], %s1307_s21 }
  0x81   : > { %1861 = dma.done.wait (%p2371_p1), %s265_s28, 2048  }
  0x82   : > { %1863 = vsyncadd (%p2371_p1), %s265_s28, 4294965248  ;;  %p2372_p11 = scmp.ne.s32.totalorder %s2359_s23, 0 }
  0x84   : > { %1865 = dma.done.wait (%p2372_p11), [#allocation7], 400  }
  0x85   : > { %1867 = vsyncadd (%p2372_p11), [#allocation7], 4294966896 }
  0x86   : > { %1869 = dma.done.wait (%p2372_p11), [#allocation10], 16  }
  0x87   : > { %1871 = vsyncadd (%p2372_p11), [#allocation10], 4294967280  ;;  %v1675_v0 = vld [vmem:[#allocation6] sm:$0xff]   ;;  %v1676_v1 = vld [vmem:[#allocation6 + $0x8] sm:$0xff]   ;;  %vm513_vm0 = vcmask 392192   ;;  %s2228_s23 = scalar_lea.vmem [#allocation11], %s1307_s21 }
  0x88   : > { %1534 = vmatprep.subr.bf16.mxu0 %v1675_v0  ;;  %1572 = vmatprep.subr.bf16.mxu1 %v1675_v0  ;;  %v1677_v2 = vld [vmem:[#allocation6 + $0x10] sm:$0xff]   ;;  %v1678_v3 = vld [vmem:[%s2156_s26] sm:$0xff]   ;;  %v1680_v5 = vld [vmem:[%s2156_s26 + $0x8] sm:$0xff]   ;;  %s1419_s25 = sshll.u32 %s1890_s18, 11  ;;  %s1171_s27 = sshll.u32 %s2228_s23, 4  ;;  %s2298_s27 = int_to_ptr.vmem [resolvable:$true] %s1171_s27 }
  0x89   : > { %1535 = vmatpush3.bf16.msra.mxu0 %v1675_v0  ;;  %1575 = vmatpush3.bf16.msra.mxu1 %v1675_v0  ;;  %v1679_v4 = vld [vmem:[%s2156_s26 + $0x40] sm:$0xff]   ;;  %v1681_v6 = vld [vmem:[%s2156_s26 + $0x48] sm:$0xff]   ;;  %v1682_v7 = vld [vmem:[%s2156_s26 + $0x10] sm:$0xff]   ;;  %s2296_s24 = scalar_lea.hbm %s2353_s4, %s1419_s25  ;;  %s1157_s18 = scalar_lea.sflag [#allocation5], %s2150_s14 }
  0x8a   : > { %1536 = vmatprep.subr.bf16.mxu0 %v1676_v1  ;;  %1573 = vmatprep.subr.bf16.mxu1 %v1676_v1  ;;  %v1683_v8 = vld [vmem:[%s2156_s26 + $0x50] sm:$0xff]   ;;  %v1684_v9 = vld [vmem:[%s2156_s26 + $0x18] sm:$0xff]   ;;  %v1686_v11 = vld [vmem:[%s2156_s26 + $0x20] sm:$0xff]   ;;  %s1808_s6 = scalar_lea.vmem %s2298_s27, 2048  ;;  %s1906_s10 = smov [#allocation11]  }
  0x8b   : > { %1540 = vmatprep.mubr.msk.bf16.mxu0 %vm513_vm0, %v1678_v3  ;;  %1556 = vmatprep.mubr.msk.bf16.mxu1 %vm513_vm0, %v1679_v4  ;;  %v1685_v10 = vld [vmem:[%s2156_s26 + $0x58] sm:$0xff]   ;;  %v1687_v12 = vld [vmem:[%s2156_s26 + $0x60] sm:$0xff]   ;;  %v1688_v13 = vld [vmem:[%s2156_s26 + $0x28] sm:$0xff]   ;;  %p1809_p13 = scmp.ne.s32.totalorder %s2298_s27, %s1808_s6  ;;  %s1812_s29 = sshll.u32 %s1906_s10, 4  ;;  %s1813_s29 = int_to_ptr.vmem [resolvable:$false] %s1812_s29 }
  0x8c   : > { %v1689_v14 = vld [vmem:[%s2156_s26 + $0x68] sm:$0xff]   ;;  %v1690_v15 = vld [vmem:[%s2156_s26 + $0x30] sm:$0xff]   ;;  %v1692_v17 = vld [vmem:[%s2156_s26 + $0x38] sm:$0xff]   ;;  %s1814_s12 = scalar_lea.vmem %s1813_s29, 4096  ;;  %p1815_p5 = scmp.lt.s32.totalorder %s2298_s27, %s1813_s29 }
  0x8d   : > { %1537 = vmatpush3.bf16.msra.mxu0 %v1676_v1  ;;  %1576 = vmatpush3.bf16.msra.mxu1 %v1676_v1  ;;  %v1691_v16 = vld [vmem:[%s2156_s26 + $0x70] sm:$0xff]   ;;  %v1693_v18 = vld [vmem:[%s2156_s26 + $0x78] sm:$0xff]   ;;  %p1810_p6 = pnand %p1809_p13, %p2089_p10  ;;  %p1816_p7 = scmp.lt.s32.totalorder %s1814_s12, %s1808_s6 }
  0x8e   : > { %1538 = vmatprep.subr.bf16.mxu0 %v1677_v2  ;;  %1574 = vmatprep.subr.bf16.mxu1 %v1677_v2  ;;  %v2202_v19 = vld [vmem:[#allocation8] ss:$0 sm:$0xff]  ;;  %v2204_v21 = vld [vmem:[#allocation9] ss:$0 sm:$0xff] }
  0x8f   : > { %p1811_p3 = pneg %p1810_p6  ;;  %p1817_p9 = por %p1816_p7, %p1815_p5 }
  0x91   : > { %1539 = vmatpush3.bf16.msra.mxu0 %v1677_v2  ;;  %1577 = vmatpush3.bf16.msra.mxu1 %v1677_v2  ;;  %p1818_p0 = pnand %p1817_p9, %p1811_p3 }
  0x94   : > { %1541 = vmatmul.mubr.msk.bf16.vlgmr.msra.gmra.mrb[0].mxu0 %vm513_vm0, %v1680_v5  ;;  %1557 = vmatmul.mubr.msk.bf16.vlgmr.msra.gmra.mrb[0].mxu1 %vm513_vm0, %v1681_v6 }
  0x95   : > { %1544 = vmatprep.mubr.msk.bf16.mxu0 %vm513_vm0, %v1682_v7  ;;  %1560 = vmatprep.mubr.msk.bf16.mxu1 %vm513_vm0, %v1683_v8 }
  0x9c   : > { %1545 = vmatmul.mubr.msk.bf16.gmra.mrb[4].mxu0 %vm513_vm0, %v1684_v9  ;;  %1561 = vmatmul.mubr.msk.bf16.gmra.mrb[4].mxu1 %vm513_vm0, %v1685_v10 }
  0x9d   : > { %1548 = vmatprep.mubr.msk.bf16.mxu0 %vm513_vm0, %v1686_v11  ;;  %1564 = vmatprep.mubr.msk.bf16.mxu1 %vm513_vm0, %v1687_v12 }
  0xa4   : > { %1549 = vmatmul.mubr.msk.bf16.gmra.mrb[8].mxu0 %vm513_vm0, %v1688_v13  ;;  %1565 = vmatmul.mubr.msk.bf16.gmra.mrb[8].mxu1 %vm513_vm0, %v1689_v14 }
  0xa5   : > { %1552 = vmatprep.mubr.msk.bf16.mxu0 %vm513_vm0, %v1690_v15  ;;  %1568 = vmatprep.mubr.msk.bf16.mxu1 %vm513_vm0, %v1691_v16 }
  0xac   : > { %1553 = vmatmul.mubr.msk.bf16.gmra.mrb[12].mxu0 %vm513_vm0, %v1692_v17  ;;  %1569 = vmatmul.mubr.msk.bf16.gmra.mrb[12].mxu1 %vm513_vm0, %v1693_v18 }
 0x167   : > { %v1542_v20 = vpop.f32.mrb[0].mxu0  ;;  %v1558_v22 = vpop.f32.mrb[0].mxu1 }
 0x168   : > { %v831_v23 = vmul.f32 %v1542_v20, %v2202_v19  ;;  %v847_v24 = vmul.f32 %v1558_v22, %v2202_v19  ;;  %v596_v25 = vpop.f32.mrb[1].mxu0  ;;  %v660_v26 = vpop.f32.mrb[1].mxu1 }
 0x169   : > { %v829_v27 = vmul.f32 %v2202_v19, %v596_v25  ;;  %v845_v28 = vmul.f32 %v2202_v19, %v660_v26  ;;  %v1543_v29 = vpop.f32.mrb[2].mxu0  ;;  %v1559_v30 = vpop.f32.mrb[2].mxu1 }
 0x16a   : > { %v870_v31 = vadd.f32 %v2204_v21, %v831_v23  ;;  %v886_v32 = vadd.f32 %v2204_v21, %v847_v24  ;;  %v832_v33 = vmul.f32 %v1543_v29, %v2202_v19  ;;  %v848_v34 = vmul.f32 %v1559_v30, %v2202_v19  ;;  %v599_v35 = vpop.f32.mrb[3].mxu0  ;;  %v663_v36 = vpop.f32.mrb[3].mxu1 }
 0x16b   : > { %v868_v37 = vadd.f32 %v2204_v21, %v829_v27  ;;  %v884_v38 = vadd.f32 %v2204_v21, %v845_v28  ;;  %v830_v39 = vmul.f32 %v2202_v19, %v599_v35  ;;  %v846_v40 = vmul.f32 %v2202_v19, %v663_v36 }
 0x16c   : > { %vm902_vm1 = vcmp.ge.f32.partialorder %v870_v31, 0.0  ;;  %v934_v41 = vmul.f32 0.2, %v870_v31  ;;  %vm918_vm2 = vcmp.ge.f32.partialorder %v886_v32, 0.0  ;;  %v950_v42 = vmul.f32 0.2, %v886_v32 }
 0x16d   : > { %vm900_vm3 = vcmp.ge.f32.partialorder %v868_v37, 0.0  ;;  %v932_v43 = vmul.f32 0.2, %v868_v37  ;;  %vm916_vm4 = vcmp.ge.f32.partialorder %v884_v38, 0.0  ;;  %v948_v44 = vmul.f32 0.2, %v884_v38 }
 0x16e   : > { %v966_v45 = vsel %vm902_vm1, %v870_v31, %v934_v41  ;;  %v982_v46 = vsel %vm918_vm2, %v886_v32, %v950_v42  ;;  %v871_v47 = vadd.f32 %v2204_v21, %v832_v33  ;;  %v887_v48 = vadd.f32 %v2204_v21, %v848_v34 }
 0x16f   : > { %v964_v49 = vsel %vm900_vm3, %v868_v37, %v932_v43  ;;  %v980_v50 = vsel %vm916_vm4, %v884_v38, %v948_v44  ;;  %v869_v51 = vadd.f32 %v2204_v21, %v830_v39  ;;  %v885_v52 = vadd.f32 %v2204_v21, %v846_v40  ;;  %v1546_v53 = vpop.f32.mrb[4].mxu0  ;;  %v1562_v54 = vpop.f32.mrb[4].mxu1 }
 0x170   : > { %vm903_vm5 = vcmp.ge.f32.partialorder %v871_v47, 0.0  ;;  %v935_v55 = vmul.f32 0.2, %v871_v47  ;;  %vm919_vm6 = vcmp.ge.f32.partialorder %v887_v48, 0.0  ;;  %v951_v56 = vmul.f32 0.2, %v887_v48 }
 0x171   : > { %vm901_vm7 = vcmp.ge.f32.partialorder %v869_v51, 0.0  ;;  %v933_v57 = vmul.f32 0.2, %v869_v51  ;;  %vm917_vm8 = vcmp.ge.f32.partialorder %v885_v52, 0.0  ;;  %v949_v58 = vmul.f32 0.2, %v885_v52 }
 0x172   : > { %v967_v59 = vsel %vm903_vm5, %v871_v47, %v935_v55  ;;  %v983_v60 = vsel %vm919_vm6, %v887_v48, %v951_v56  ;;  %v835_v61 = vmul.f32 %v1546_v53, %v2202_v19  ;;  %v851_v62 = vmul.f32 %v1562_v54, %v2202_v19  ;;  %v612_v63 = vpop.f32.mrb[5].mxu0  ;;  %v676_v0 = vpop.f32.mrb[5].mxu1 }
 0x173   : > { %v1428_v1 = vpack.c.bf16 %v967_v59, %v966_v45  ;;  %v1468_v2 = vpack.c.bf16 %v983_v60, %v982_v46  ;;  %v965_v3 = vsel %vm901_vm7, %v869_v51, %v933_v57  ;;  %v981_v4 = vsel %vm917_vm8, %v885_v52, %v949_v58  ;;  %v1547_v5 = vpop.f32.mrb[6].mxu0  ;;  %v1563_v6 = vpop.f32.mrb[6].mxu1 }
 0x174   : > { %v1423_v7 = vpack.c.bf16 %v965_v3, %v964_v49  ;;  %v1463_v8 = vpack.c.bf16 %v981_v4, %v980_v50  ;;  %v874_v9 = vadd.f32 %v2204_v21, %v835_v61  ;;  %v890_v10 = vadd.f32 %v2204_v21, %v851_v62  ;;  %v615_v11 = vpop.f32.mrb[7].mxu0  ;;  %v679_v12 = vpop.f32.mrb[7].mxu1 }
 0x175   : > { %1500 = vst [vmem:[%s2228_s23 + $0x8] sm:$0xff] %v1428_v1   ;;  %1508 = vst [vmem:[%s2228_s23 + $0x48] sm:$0xff] %v1468_v2   ;;  %v833_v13 = vmul.f32 %v2202_v19, %v612_v63  ;;  %v849_v14 = vmul.f32 %v2202_v19, %v676_v0  ;;  %v836_v15 = vmul.f32 %v1547_v5, %v2202_v19 }
 0x176   : > { %v852_v16 = vmul.f32 %v1563_v6, %v2202_v19  ;;  %1424 = vst [vmem:[%s2228_s23] sm:$0xff] %v1423_v7   ;;  %1507 = vst [vmem:[%s2228_s23 + $0x40] sm:$0xff] %v1463_v8   ;;  %vm906_vm9 = vcmp.ge.f32.partialorder %v874_v9, 0.0  ;;  %v938_v17 = vmul.f32 0.2, %v874_v9  ;;  %vm922_vm10 = vcmp.ge.f32.partialorder %v890_v10, 0.0 }
 0x177   : > { %v954_v18 = vmul.f32 0.2, %v890_v10  ;;  %v872_v20 = vadd.f32 %v2204_v21, %v833_v13  ;;  %v888_v22 = vadd.f32 %v2204_v21, %v849_v14  ;;  %v875_v23 = vadd.f32 %v2204_v21, %v836_v15  ;;  %v1550_v25 = vpop.f32.mrb[8].mxu0  ;;  %v1566_v26 = vpop.f32.mrb[8].mxu1 }
 0x178   : > { %v891_v24 = vadd.f32 %v2204_v21, %v852_v16  ;;  %v970_v27 = vsel %vm906_vm9, %v874_v9, %v938_v17  ;;  %v834_v29 = vmul.f32 %v2202_v19, %v615_v11  ;;  %v850_v30 = vmul.f32 %v2202_v19, %v679_v12  ;;  %v628_v31 = vpop.f32.mrb[9].mxu0  ;;  %v692_v32 = vpop.f32.mrb[9].mxu1 }
 0x179   : > { %v986_v28 = vsel %vm922_vm10, %v890_v10, %v954_v18  ;;  %vm904_vm11 = vcmp.ge.f32.partialorder %v872_v20, 0.0  ;;  %v936_v33 = vmul.f32 0.2, %v872_v20  ;;  %vm920_vm12 = vcmp.ge.f32.partialorder %v888_v22, 0.0  ;;  %v1551_v41 = vpop.f32.mrb[10].mxu0  ;;  %v1567_v42 = vpop.f32.mrb[10].mxu1 }
 0x17a   : > { %v952_v34 = vmul.f32 0.2, %v888_v22  ;;  %vm907_vm13 = vcmp.ge.f32.partialorder %v875_v23, 0.0  ;;  %v939_v35 = vmul.f32 0.2, %v875_v23  ;;  %vm923_vm14 = vcmp.ge.f32.partialorder %v891_v24, 0.0 }
 0x17b   : > { %v955_v36 = vmul.f32 0.2, %v891_v24  ;;  %v968_v37 = vsel %vm904_vm11, %v872_v20, %v936_v33  ;;  %v873_v39 = vadd.f32 %v2204_v21, %v834_v29  ;;  %v889_v40 = vadd.f32 %v2204_v21, %v850_v30  ;;  %v631_v47 = vpop.f32.mrb[11].mxu0  ;;  %v695_v48 = vpop.f32.mrb[11].mxu1 }
 0x17c   : > { %v984_v38 = vsel %vm920_vm12, %v888_v22, %v952_v34  ;;  %v971_v43 = vsel %vm907_vm13, %v875_v23, %v939_v35  ;;  %v839_v45 = vmul.f32 %v1550_v25, %v2202_v19  ;;  %v855_v46 = vmul.f32 %v1566_v26, %v2202_v19 }
 0x17d   : > { %v987_v44 = vsel %vm923_vm14, %v891_v24, %v955_v36  ;;  %v1438_v49 = vpack.c.bf16 %v971_v43, %v970_v27  ;;  %vm905_vm15 = vcmp.ge.f32.partialorder %v873_v39, 0.0  ;;  %v937_v51 = vmul.f32 0.2, %v873_v39 }
 0x17e   : > { %v1478_v50 = vpack.c.bf16 %v987_v44, %v986_v28  ;;  %vm921_vm0 = vcmp.ge.f32.partialorder %v889_v40, 0.0  ;;  %v953_v52 = vmul.f32 0.2, %v889_v40  ;;  %v878_v53 = vadd.f32 %v2204_v21, %v839_v45 }
 0x17f   : > { %v894_v54 = vadd.f32 %v2204_v21, %v855_v46  ;;  %1502 = vst [vmem:[%s2228_s23 + $0x18] sm:$0xff] %v1438_v49   ;;  %v969_v55 = vsel %vm905_vm15, %v873_v39, %v937_v51  ;;  %v837_v56 = vmul.f32 %v2202_v19, %v628_v31  ;;  %v853_v57 = vmul.f32 %v2202_v19, %v692_v32  ;;  %v1554_v59 = vpop.f32.mrb[12].mxu0  ;;  %v1570_v60 = vpop.f32.mrb[12].mxu1 }
 0x180   : > { %1510 = vst [vmem:[%s2228_s23 + $0x58] sm:$0xff] %v1478_v50   ;;  %v840_v58 = vmul.f32 %v1551_v41, %v2202_v19  ;;  %v1433_v61 = vpack.c.bf16 %v969_v55, %v968_v37  ;;  %v985_v62 = vsel %vm921_vm0, %v889_v40, %v953_v52  ;;  %vm910_vm1 = vcmp.ge.f32.partialorder %v878_v53, 0.0  ;;  %v644_v0 = vpop.f32.mrb[13].mxu0  ;;  %v708_v1 = vpop.f32.mrb[13].mxu1 }
 0x181   : > { %v942_v63 = vmul.f32 0.2, %v878_v53  ;;  %v1473_v2 = vpack.c.bf16 %v985_v62, %v984_v38  ;;  %vm926_vm2 = vcmp.ge.f32.partialorder %v894_v54, 0.0  ;;  %v958_v3 = vmul.f32 0.2, %v894_v54  ;;  %v1555_v5 = vpop.f32.mrb[14].mxu0 }
 0x182   : > { %v876_v4 = vadd.f32 %v2204_v21, %v837_v56  ;;  %v1571_v6 = vpop.f32.mrb[14].mxu1  ;;  %1501 = vst [vmem:[%s2228_s23 + $0x10] sm:$0xff] %v1433_v61   ;;  %v892_v7 = vadd.f32 %v2204_v21, %v853_v57  ;;  %v879_v8 = vadd.f32 %v2204_v21, %v840_v58  ;;  %v856_v9 = vmul.f32 %v1567_v42, %v2202_v19  ;;  %v647_v10 = vpop.f32.mrb[15].mxu0 }
 0x183   : > { %v711_v11 = vpop.f32.mrb[15].mxu1  ;;  %1509 = vst [vmem:[%s2228_s23 + $0x50] sm:$0xff] %v1473_v2   ;;  %v974_v12 = vsel %vm910_vm1, %v878_v53, %v942_v63  ;;  %v990_v13 = vsel %vm926_vm2, %v894_v54, %v958_v3  ;;  %v838_v14 = vmul.f32 %v2202_v19, %v631_v47  ;;  %v854_v20 = vmul.f32 %v2202_v19, %v695_v48 }
 0x184   : > { %vm908_vm3 = vcmp.ge.f32.partialorder %v876_v4, 0.0  ;;  %v940_v15 = vmul.f32 0.2, %v876_v4  ;;  %vm911_vm4 = vcmp.ge.f32.partialorder %v879_v8, 0.0  ;;  %v943_v16 = vmul.f32 0.2, %v879_v8 }
 0x185   : > { %vm924_vm5 = vcmp.ge.f32.partialorder %v892_v7, 0.0  ;;  %v895_v17 = vadd.f32 %v2204_v21, %v856_v9  ;;  %v877_v18 = vadd.f32 %v2204_v21, %v838_v14  ;;  %v956_v22 = vmul.f32 0.2, %v892_v7 }
 0x186   : > { %v975_v23 = vsel %vm911_vm4, %v879_v8, %v943_v16  ;;  %v843_v24 = vmul.f32 %v1554_v59, %v2202_v19  ;;  %v859_v25 = vmul.f32 %v1570_v60, %v2202_v19  ;;  %v972_v28 = vsel %vm908_vm3, %v876_v4, %v940_v15 }
 0x187   : > { %v1448_v26 = vpack.c.bf16 %v975_v23, %v974_v12  ;;  %vm927_vm6 = vcmp.ge.f32.partialorder %v895_v17, 0.0  ;;  %v959_v27 = vmul.f32 0.2, %v895_v17  ;;  %vm909_vm7 = vcmp.ge.f32.partialorder %v877_v18, 0.0 }
 0x188   : > { %v941_v29 = vmul.f32 0.2, %v877_v18  ;;  %v893_v30 = vadd.f32 %v2204_v21, %v854_v20  ;;  %v882_v31 = vadd.f32 %v2204_v21, %v843_v24  ;;  %v898_v33 = vadd.f32 %v2204_v21, %v859_v25 }
 0x189   : > { %1504 = vst [vmem:[%s2228_s23 + $0x28] sm:$0xff] %v1448_v26   ;;  %v991_v32 = vsel %vm927_vm6, %v895_v17, %v959_v27  ;;  %v841_v34 = vmul.f32 %v2202_v19, %v644_v0  ;;  %v844_v35 = vmul.f32 %v1555_v5, %v2202_v19  ;;  %v857_v40 = vmul.f32 %v2202_v19, %v708_v1 }
 0x18a   : > { %v1488_v36 = vpack.c.bf16 %v991_v32, %v990_v13  ;;  %v973_v37 = vsel %vm909_vm7, %v877_v18, %v941_v29  ;;  %vm925_vm8 = vcmp.ge.f32.partialorder %v893_v30, 0.0  ;;  %v957_v38 = vmul.f32 0.2, %v893_v30 }
 0x18b   : > { %v1443_v39 = vpack.c.bf16 %v973_v37, %v972_v28  ;;  %v988_v41 = vsel %vm924_vm5, %v892_v7, %v956_v22  ;;  %vm914_vm9 = vcmp.ge.f32.partialorder %v882_v31, 0.0  ;;  %v946_v43 = vmul.f32 0.2, %v882_v31 }
 0x18c   : > { %1512 = vst [vmem:[%s2228_s23 + $0x68] sm:$0xff] %v1488_v36   ;;  %v989_v42 = vsel %vm925_vm8, %v893_v30, %v957_v38  ;;  %v962_v45 = vmul.f32 0.2, %v898_v33  ;;  %v883_v46 = vadd.f32 %v2204_v21, %v844_v35  ;;  %v860_v47 = vmul.f32 %v1571_v6, %v2202_v19 }
 0x18d   : > { %1503 = vst [vmem:[%s2228_s23 + $0x20] sm:$0xff] %v1443_v39   ;;  %v1483_v44 = vpack.c.bf16 %v989_v42, %v988_v41  ;;  %vm930_vm10 = vcmp.ge.f32.partialorder %v898_v33, 0.0  ;;  %v880_v48 = vadd.f32 %v2204_v21, %v841_v34  ;;  %v896_v49 = vadd.f32 %v2204_v21, %v857_v40 }
 0x18e   : > { %vm915_vm11 = vcmp.ge.f32.partialorder %v883_v46, 0.0  ;;  %v947_v50 = vmul.f32 0.2, %v883_v46  ;;  %v899_v51 = vadd.f32 %v2204_v21, %v860_v47  ;;  %v978_v52 = vsel %vm914_vm9, %v882_v31, %v946_v43 }
 0x18f   : > { %1511 = vst [vmem:[%s2228_s23 + $0x60] sm:$0xff] %v1483_v44   ;;  %v842_v53 = vmul.f32 %v2202_v19, %v647_v10  ;;  %v858_v54 = vmul.f32 %v2202_v19, %v711_v11  ;;  %v994_v55 = vsel %vm930_vm10, %v898_v33, %v962_v45  ;;  %v944_v58 = vmul.f32 0.2, %v880_v48 }
 0x190   : > { %v979_v56 = vsel %vm915_vm11, %v883_v46, %v947_v50  ;;  %vm931_vm12 = vcmp.ge.f32.partialorder %v899_v51, 0.0  ;;  %v963_v57 = vmul.f32 0.2, %v899_v51  ;;  %vm912_vm13 = vcmp.ge.f32.partialorder %v880_v48, 0.0 }
 0x191   : > { %v1458_v59 = vpack.c.bf16 %v979_v56, %v978_v52  ;;  %v881_v60 = vadd.f32 %v2204_v21, %v842_v53  ;;  %v897_v61 = vadd.f32 %v2204_v21, %v858_v54  ;;  %vm928_vm14 = vcmp.ge.f32.partialorder %v896_v49, 0.0 }
 0x192   : > { %v960_v62 = vmul.f32 0.2, %v896_v49  ;;  %v995_v63 = vsel %vm931_vm12, %v899_v51, %v963_v57  ;;  %v976_v2 = vsel %vm912_vm13, %v880_v48, %v944_v58 }
 0x193   : > { %1506 = vst [vmem:[%s2228_s23 + $0x38] sm:$0xff] %v1458_v59   ;;  %v1498_v0 = vpack.c.bf16 %v995_v63, %v994_v55  ;;  %vm913_vm15 = vcmp.ge.f32.partialorder %v881_v60, 0.0  ;;  %v945_v19 = vmul.f32 0.2, %v881_v60  ;;  %vm929_vm0 = vcmp.ge.f32.partialorder %v897_v61, 0.0 }
 0x194   : > { %v961_v1 = vmul.f32 0.2, %v897_v61  ;;  %v992_v21 = vsel %vm928_vm14, %v896_v49, %v960_v62 }
 0x195   : > { %1514 = vst [vmem:[%s2228_s23 + $0x78] sm:$0xff] %v1498_v0   ;;  %v977_v3 = vsel %vm913_vm15, %v881_v60, %v945_v19 }
 0x196   : > { %v1453_v4 = vpack.c.bf16 %v977_v3, %v976_v2  ;;  %v993_v5 = vsel %vm929_vm0, %v897_v61, %v961_v1 }
 0x197   : > { %v1493_v6 = vpack.c.bf16 %v993_v5, %v992_v21 }
 0x198   : > { %1505 = vst [vmem:[%s2228_s23 + $0x30] sm:$0xff] %v1453_v4  }
 0x199   : > { %1513 = vst [vmem:[%s2228_s23 + $0x70] sm:$0xff] %v1493_v6  }
 0x19a   : > { %1821 = shalt.err (!%p1818_p0)
}
 0x19b   : > { %s1822_s9 = scalar_lea.hbm %s2296_s24, 2048  ;;  %s1826_s21 = scalar_lea.hbm %s2353_s4, 4096 }
 0x19c   : > { %p1823_p4 = scmp.ne.s32.totalorder %s2296_s24, %s1822_s9  ;;  %p1827_p12 = scmp.lt.u32.totalorder %s2296_s24, %s2353_s4 }
 0x19d   : > { %p1828_p1 = scmp.lt.u32.totalorder %s1826_s21, %s1822_s9  ;;  %p1830_p13 = scmp.lt.u32.totalorder %s1822_s9, %s2296_s24 }
 0x19e   : > { %p1824_p2 = pnand %p1823_p4, %p2089_p10 }
 0x19f   : > { %p1829_p11 = por %p1828_p1, %p1827_p12 }
 0x1a0   : > { %p1825_p8 = pneg %p1824_p2 }
 0x1a1   : > { %p1831_p6 = por %p1830_p13, %p1829_p11 }
 0x1a3   : > { %p1832_p3 = pnand %p1831_p6, %p1825_p8 }
 0x1a5   : > { %1835 = shalt.err (!%p1832_p3)
}
 0x1a6   : > { %s1907_s23 = smov 64   ;;  %s1908_s25 = smov 4  }
 0x1a7   : > { %1592 = dma.vmem_to_hbm [thread:$0]  (%p2089_p10), %s2298_s27, 2048, %s2296_s24, %s1157_s18, %s1907_s23, %s1907_s23, %s1908_s25  }
 0x1a8 PF: > { %s2373_s5 = sld [smem:[#allocation16_spill]]  ;;  %s1186_s7 = sand.u32 1, %s1878_s15  }
 0x1a9   : > { %p2375_p7 = scmp.ge.s32.totalorder %s1898_s20, 2  ;;  %s1187_s6 = scalar_lea.sflag [#allocation5], %s1186_s7 }
 0x1ae   : > { %p2374_p5 = scmp.ne.s32.totalorder %s2373_s5, 0 }
 0x1b0   : > { %p1609_p9 = pnand %p2375_p7, %p2374_p5 }
 0x1b2   : > { %1873 = dma.done.wait (!%p1609_p9), %s1187_s6, 2048  }
 0x1b3   : > { %1875 = vsyncadd (!%p1609_p9), %s1187_s6, 4294965248  ;;  %s22_s20 = sadd.s32 1, %s1898_s20   ;;  %s2376_s15 = smov %s1882_s16 }
 0x1b4   : > { %p19_p0 = scmp.ge.s32.totalorder %s22_s20, 4   ;;  %s2377_s16 = smov %s1886_s17 }
 0x1b5   : > { %s2378_s17 = smov %s2101_s22  ;;  %s2379_s18 = smov %s1894_s19 }
 0x1b6   : > { %s2380_s19 = smov %s2382_s11  ;;  %21 = sbr.rel (!%p19_p0) target bundleno = 8 (0x8), region = 104 }
 0x1bd   :  { %1192 = vsyncpa [#allocation4], 1 }
 0x1be   :  { %1194 = vsyncpa [#allocation4 + $0x1], 1 }
 0x1bf   :  { %1195 = vsyncpa [#allocation7], 1 }
 0x1c0   :  { %1196 = vsyncpa [#allocation10], 1 }
 0x1c1   :  { %1197 = vsyncpa [#allocation5], 1 }
 0x1c2   :  { %1199 = vsyncpa [#allocation5 + $0x1], 1 }

// kernel: _lambda_.6
= control target key start
LH: loop header
LB: loop body
LE: loop exit
PB: predicated region body
PF: predicated region fallthrough
CT: control target
= control target key end

     0   :  { %9 = vsyncpa [#allocation4], 0  ;;  %s1023_s0 = inlined_call_operand.hbm [shape: bf16[128,128], index: 0, kind: input, shape index: {}]   ;;  %s1024_s1 = inlined_call_operand.hbm [shape: bf16[128,128], index: 1, kind: input, shape index: {}]   ;;  %s1025_s2 = inlined_call_operand.hbm [shape: f32[1,128], index: 2, kind: input, shape index: {}]   ;;  %s1026_s3 = inlined_call_operand.hbm [shape: f32[1,128], index: 3, kind: input, shape index: {}]   ;;  %s1027_s4 = inlined_call_operand.hbm [shape: bf16[128,128], index: 4, kind: output, shape index: {}]  }
   0x1   :  { %10 = vsyncpa [#allocation7], 0 }
   0x2   :  { %11 = vsyncpa [#allocation10], 0 }
   0x3   :  { %12 = vsyncpa [#allocation5], 0  ;;  %s877_s15 = smov [#allocation6]   ;;  %s878_s17 = smov [#allocation3]  }
   0x4   :  { %s30_s16 = sshll.u32 %s877_s15, 4  ;;  %s18_s18 = sshll.u32 %s878_s17, 4  ;;  %s31_s16 = int_to_ptr.vmem [resolvable:$true] %s30_s16  ;;  %s909_s18 = int_to_ptr.vmem [resolvable:$true] %s18_s18 }
   0x5   :  { %s759_s21 = scalar_lea.hbm %s1024_s1, 1024 }
   0x6   :  { %p760_p0 = scmp.ne.s32.totalorder %s1024_s1, %s759_s21  ;;  %p763_p1 = scmp.lt.u32.totalorder %s759_s21, %s1024_s1 }
   0x8   :  { %p765_p2 = pnand %p763_p1, %p760_p0 }
   0xa   :  { %768 = shalt.err (!%p765_p2)
}
   0xb   :  { %s769_s26 = scalar_lea.vmem %s31_s16, 1024  ;;  %p774_p4 = scmp.lt.s32.totalorder %s31_s16, %s31_s16 }
   0xc   :  { %p770_p3 = scmp.ne.s32.totalorder %s31_s16, %s769_s26  ;;  %p775_p5 = scmp.lt.s32.totalorder %s769_s26, %s769_s26 }
   0xe   :  { %p776_p6 = por %p775_p5, %p774_p4 }
  0x10   :  { %p777_p7 = pnand %p776_p6, %p770_p3 }
  0x12   :  { %780 = shalt.err (!%p777_p7)
}
  0x13   :  { %s879_s27 = smov 64   ;;  %s880_s28 = smov 4  }
  0x14   :  { %36 = dma.hbm_to_vmem [thread:$0]  %s1024_s1, 1024, %s31_s16, [#allocation7], %s879_s27, %s879_s27, %s880_s28  }
  0x15   :  { %s781_s7 = scalar_lea.hbm %s1023_s0, 1024 }
  0x16   :  { %p782_p8 = scmp.ne.s32.totalorder %s1023_s0, %s781_s7  ;;  %p785_p9 = scmp.lt.u32.totalorder %s781_s7, %s1023_s0 }
  0x18   :  { %p787_p10 = pnand %p785_p9, %p782_p8 }
  0x1a   :  { %790 = shalt.err (!%p787_p10)
}
  0x1b   :  { %s791_s12 = scalar_lea.vmem %s909_s18, 1024  ;;  %p796_p12 = scmp.lt.s32.totalorder %s909_s18, %s909_s18 }
  0x1c   :  { %p792_p11 = scmp.ne.s32.totalorder %s909_s18, %s791_s12  ;;  %p797_p13 = scmp.lt.s32.totalorder %s791_s12, %s791_s12 }
  0x1e   :  { %p798_p0 = por %p797_p13, %p796_p12 }
  0x20   :  { %p799_p1 = pnand %p798_p0, %p792_p11 }
  0x22   :  { %802 = shalt.err (!%p799_p1)
}
  0x23   :  { %24 = dma.hbm_to_vmem [thread:$0]  %s1023_s0, 1024, %s909_s18, [#allocation4], %s879_s27, %s879_s27, %s880_s28  }
  0x24   :  { %s881_s14 = smov [#allocation8]   ;;  %s882_s16 = smov [#allocation9]  }
  0x25   :  { %s43_s15 = sshll.u32 %s881_s14, 4  ;;  %s53_s17 = sshll.u32 %s882_s16, 4  ;;  %s44_s15 = int_to_ptr.vmem [resolvable:$true] %s43_s15  ;;  %s54_s17 = int_to_ptr.vmem [resolvable:$true] %s53_s17 }
  0x26   :  { %s803_s21 = scalar_lea.hbm %s1025_s2, 16 }
  0x27   :  { %p804_p2 = scmp.ne.s32.totalorder %s1025_s2, %s803_s21  ;;  %p807_p3 = scmp.lt.u32.totalorder %s803_s21, %s1025_s2 }
  0x29   :  { %p809_p4 = pnand %p807_p3, %p804_p2 }
  0x2b   :  { %812 = shalt.err (!%p809_p4)
}
  0x2c   :  { %s813_s0 = scalar_lea.vmem %s44_s15, 16  ;;  %s817_s18 = scalar_lea.vmem %s44_s15, 32 }
  0x2d   :  { %p814_p5 = scmp.ne.s32.totalorder %s44_s15, %s813_s0  ;;  %p818_p6 = scmp.lt.s32.totalorder %s44_s15, %s44_s15 }
  0x2e   :  { %p819_p7 = scmp.lt.s32.totalorder %s817_s18, %s813_s0 }
  0x30   :  { %p820_p8 = por %p819_p7, %p818_p6 }
  0x32   :  { %p821_p9 = pnand %p820_p8, %p814_p5 }
  0x34   :  { %824 = shalt.err (!%p821_p9)
}
  0x35   :  { %46 = dma.hbm_to_vmem [thread:$0]  %s1025_s2, 16, %s44_s15, [#allocation7]  }
  0x36   :  { %s825_s6 = scalar_lea.hbm %s1026_s3, 16 }
  0x37   :  { %p826_p10 = scmp.ne.s32.totalorder %s1026_s3, %s825_s6  ;;  %p829_p11 = scmp.lt.u32.totalorder %s825_s6, %s1026_s3 }
  0x39   :  { %p831_p12 = pnand %p829_p11, %p826_p10 }
  0x3b   :  { %834 = shalt.err (!%p831_p12)
}
  0x3c   :  { %s835_s11 = scalar_lea.vmem %s54_s17, 16  ;;  %s839_s12 = scalar_lea.vmem %s54_s17, 32 }
  0x3d   :  { %p836_p13 = scmp.ne.s32.totalorder %s54_s17, %s835_s11  ;;  %p840_p0 = scmp.lt.s32.totalorder %s54_s17, %s54_s17 }
  0x3e   :  { %p841_p1 = scmp.lt.s32.totalorder %s839_s12, %s835_s11 }
  0x40   :  { %p842_p2 = por %p841_p1, %p840_p0 }
  0x42   :  { %p843_p3 = pnand %p842_p2, %p836_p13 }
  0x44   :  { %846 = shalt.err (!%p843_p3)
}
  0x45   :  { %56 = dma.hbm_to_vmem [thread:$0]  %s1026_s3, 16, %s54_s17, [#allocation10]  }
  0x46   :  { %869 = dma.done.wait [#allocation4], 1024  }
  0x47   :  { %870 = vsyncadd [#allocation4], 4294966272 }
  0x48   :  { %871 = dma.done.wait [#allocation7], 1040  }
  0x49   :  { %872 = vsyncadd [#allocation7], 4294966256 }
  0x4a   :  { %873 = dma.done.wait [#allocation10], 16  }
  0x4b   :  { %874 = vsyncadd [#allocation10], 4294967280  ;;  %v743_v0 = vld [vmem:[#allocation6] sm:$0xff]   ;;  %v744_v1 = vld [vmem:[#allocation6 + $0x8] sm:$0xff]   ;;  %s883_s3 = smov [#allocation11]  }
  0x4c   :  { %688 = vmatprep.subr.bf16.mxu0 %v743_v0  ;;  %720 = vmatprep.subr.bf16.mxu1 %v743_v0  ;;  %v745_v2 = vld [vmem:[#allocation6 + $0x10] sm:$0xff]   ;;  %v746_v3 = vld [vmem:[#allocation6 + $0x18] sm:$0xff]   ;;  %v751_v4 = vld [vmem:[#allocation3] sm:$0xff]   ;;  %s561_s13 = sshll.u32 %s883_s3, 4  ;;  %s562_s13 = int_to_ptr.vmem [resolvable:$true] %s561_s13 }
  0x4d   :  { %689 = vmatpush3.bf16.msra.mxu0 %v743_v0  ;;  %728 = vmatpush3.bf16.msra.mxu1 %v743_v0  ;;  %v752_v5 = vld [vmem:[#allocation3 + $0x20] sm:$0xff]   ;;  %v748_v7 = vld [vmem:[#allocation6 + $0x28] sm:$0xff]   ;;  %v749_v8 = vld [vmem:[#allocation6 + $0x30] sm:$0xff]   ;;  %s847_s14 = scalar_lea.vmem %s562_s13, 1024  ;;  %p852_p5 = scmp.lt.s32.totalorder %s562_s13, %s562_s13 }
  0x4e   :  { %690 = vmatprep.subr.bf16.mxu0 %v744_v1  ;;  %721 = vmatprep.subr.bf16.mxu1 %v744_v1  ;;  %v747_v6 = vld [vmem:[#allocation6 + $0x20] sm:$0xff]   ;;  %v750_v9 = vld [vmem:[#allocation6 + $0x38] sm:$0xff]   ;;  %v753_v10 = vld [vmem:[#allocation3 + $0x8] sm:$0xff]   ;;  %p848_p4 = scmp.ne.s32.totalorder %s562_s13, %s847_s14  ;;  %p853_p6 = scmp.lt.s32.totalorder %s847_s14, %s847_s14 }
  0x4f   :  { %704 = vmatprep.mubr.bf16.mxu0 %v751_v4  ;;  %712 = vmatprep.mubr.bf16.mxu1 %v752_v5  ;;  %v754_v11 = vld [vmem:[#allocation3 + $0x28] sm:$0xff]   ;;  %v755_v12 = vld [vmem:[#allocation3 + $0x10] sm:$0xff]   ;;  %v757_v14 = vld [vmem:[#allocation3 + $0x18] sm:$0xff]  }
  0x50   :  { %v756_v13 = vld [vmem:[#allocation3 + $0x30] sm:$0xff]   ;;  %v758_v15 = vld [vmem:[#allocation3 + $0x38] sm:$0xff]   ;;  %v970_v16 = vld [vmem:[#allocation8] ss:$0 sm:$0xff]  ;;  %p854_p7 = por %p853_p6, %p852_p5 }
  0x51   :  { %691 = vmatpush3.bf16.msra.mxu0 %v744_v1  ;;  %729 = vmatpush3.bf16.msra.mxu1 %v744_v1  ;;  %v972_v18 = vld [vmem:[#allocation9] ss:$0 sm:$0xff] }
  0x52   :  { %692 = vmatprep.subr.bf16.mxu0 %v745_v2  ;;  %722 = vmatprep.subr.bf16.mxu1 %v745_v2  ;;  %p855_p8 = pnand %p854_p7, %p848_p4 }
  0x55   :  { %693 = vmatpush3.bf16.msra.mxu0 %v745_v2  ;;  %730 = vmatpush3.bf16.msra.mxu1 %v745_v2 }
  0x56   :  { %694 = vmatprep.subr.bf16.mxu0 %v746_v3  ;;  %723 = vmatprep.subr.bf16.mxu1 %v746_v3 }
  0x59   :  { %695 = vmatpush3.bf16.msra.mxu0 %v746_v3  ;;  %731 = vmatpush3.bf16.msra.mxu1 %v746_v3 }
  0x5a   :  { %696 = vmatprep.subr.bf16.mxu0 %v747_v6  ;;  %724 = vmatprep.subr.bf16.mxu1 %v747_v6 }
  0x5d   :  { %697 = vmatpush3.bf16.msra.mxu0 %v747_v6  ;;  %732 = vmatpush3.bf16.msra.mxu1 %v747_v6 }
  0x5e   :  { %698 = vmatprep.subr.bf16.mxu0 %v748_v7  ;;  %725 = vmatprep.subr.bf16.mxu1 %v748_v7 }
  0x61   :  { %699 = vmatpush3.bf16.msra.mxu0 %v748_v7  ;;  %733 = vmatpush3.bf16.msra.mxu1 %v748_v7 }
  0x62   :  { %700 = vmatprep.subr.bf16.mxu0 %v749_v8  ;;  %726 = vmatprep.subr.bf16.mxu1 %v749_v8 }
  0x65   :  { %701 = vmatpush3.bf16.msra.mxu0 %v749_v8  ;;  %734 = vmatpush3.bf16.msra.mxu1 %v749_v8 }
  0x66   :  { %702 = vmatprep.subr.bf16.mxu0 %v750_v9  ;;  %727 = vmatprep.subr.bf16.mxu1 %v750_v9 }
  0x69   :  { %703 = vmatpush3.bf16.msra.mxu0 %v750_v9  ;;  %735 = vmatpush3.bf16.msra.mxu1 %v750_v9 }
  0x6c   :  { %705 = vmatmul.mubr.bf16.vlgmr.msra.gmra.mrb[0].mxu0 %v753_v10  ;;  %713 = vmatmul.mubr.bf16.vlgmr.msra.gmra.mrb[0].mxu1 %v754_v11 }
  0x6d   :  { %708 = vmatprep.mubr.bf16.mxu0 %v755_v12  ;;  %716 = vmatprep.mubr.bf16.mxu1 %v756_v13 }
  0x74   :  { %709 = vmatmul.mubr.bf16.gmra.mrb[4].mxu0 %v757_v14  ;;  %717 = vmatmul.mubr.bf16.gmra.mrb[4].mxu1 %v758_v15 }
 0x13f   :  { %v706_v17 = vpop.f32.mrb[0].mxu0  ;;  %v714_v19 = vpop.f32.mrb[0].mxu1 }
 0x140   :  { %v391_v20 = vmul.f32 %v706_v17, %v970_v16  ;;  %v399_v21 = vmul.f32 %v714_v19, %v970_v16  ;;  %v268_v22 = vpop.f32.mrb[1].mxu0  ;;  %v300_v23 = vpop.f32.mrb[1].mxu1 }
 0x141   :  { %v389_v24 = vmul.f32 %v970_v16, %v268_v22  ;;  %v397_v25 = vmul.f32 %v970_v16, %v300_v23  ;;  %v707_v26 = vpop.f32.mrb[2].mxu0  ;;  %v715_v27 = vpop.f32.mrb[2].mxu1 }
 0x142   :  { %v414_v28 = vadd.f32 %v972_v18, %v391_v20  ;;  %v422_v29 = vadd.f32 %v972_v18, %v399_v21  ;;  %v392_v30 = vmul.f32 %v707_v26, %v970_v16  ;;  %v400_v31 = vmul.f32 %v715_v27, %v970_v16  ;;  %v271_v32 = vpop.f32.mrb[3].mxu0  ;;  %v303_v33 = vpop.f32.mrb[3].mxu1 }
 0x143   :  { %v412_v34 = vadd.f32 %v972_v18, %v389_v24  ;;  %v420_v35 = vadd.f32 %v972_v18, %v397_v25  ;;  %v390_v36 = vmul.f32 %v970_v16, %v271_v32  ;;  %v398_v37 = vmul.f32 %v970_v16, %v303_v33 }
 0x144   :  { %vm430_vm0 = vcmp.ge.f32.partialorder %v414_v28, 0.0  ;;  %v446_v38 = vmul.f32 0.2, %v414_v28  ;;  %vm438_vm1 = vcmp.ge.f32.partialorder %v422_v29, 0.0  ;;  %v454_v39 = vmul.f32 0.2, %v422_v29 }
 0x145   :  { %vm428_vm2 = vcmp.ge.f32.partialorder %v412_v34, 0.0  ;;  %v444_v40 = vmul.f32 0.2, %v412_v34  ;;  %vm436_vm3 = vcmp.ge.f32.partialorder %v420_v35, 0.0  ;;  %v452_v41 = vmul.f32 0.2, %v420_v35 }
 0x146   :  { %v462_v42 = vsel %vm430_vm0, %v414_v28, %v446_v38  ;;  %v470_v43 = vsel %vm438_vm1, %v422_v29, %v454_v39  ;;  %v415_v44 = vadd.f32 %v972_v18, %v392_v30  ;;  %v423_v45 = vadd.f32 %v972_v18, %v400_v31 }
 0x147   :  { %v460_v46 = vsel %vm428_vm2, %v412_v34, %v444_v40  ;;  %v468_v47 = vsel %vm436_vm3, %v420_v35, %v452_v41  ;;  %v413_v48 = vadd.f32 %v972_v18, %v390_v36  ;;  %v421_v49 = vadd.f32 %v972_v18, %v398_v37  ;;  %v710_v50 = vpop.f32.mrb[4].mxu0  ;;  %v718_v51 = vpop.f32.mrb[4].mxu1 }
 0x148   :  { %vm431_vm4 = vcmp.ge.f32.partialorder %v415_v44, 0.0  ;;  %v447_v52 = vmul.f32 0.2, %v415_v44  ;;  %vm439_vm5 = vcmp.ge.f32.partialorder %v423_v45, 0.0  ;;  %v455_v53 = vmul.f32 0.2, %v423_v45 }
 0x149   :  { %vm429_vm6 = vcmp.ge.f32.partialorder %v413_v48, 0.0  ;;  %v445_v54 = vmul.f32 0.2, %v413_v48  ;;  %vm437_vm7 = vcmp.ge.f32.partialorder %v421_v49, 0.0  ;;  %v453_v55 = vmul.f32 0.2, %v421_v49 }
 0x14a   :  { %v463_v56 = vsel %vm431_vm4, %v415_v44, %v447_v52  ;;  %v471_v57 = vsel %vm439_vm5, %v423_v45, %v455_v53  ;;  %v395_v58 = vmul.f32 %v710_v50, %v970_v16  ;;  %v403_v59 = vmul.f32 %v718_v51, %v970_v16  ;;  %v284_v60 = vpop.f32.mrb[5].mxu0  ;;  %v316_v61 = vpop.f32.mrb[5].mxu1 }
 0x14b   :  { %v633_v62 = vpack.c.bf16 %v463_v56, %v462_v42  ;;  %v653_v63 = vpack.c.bf16 %v471_v57, %v470_v43  ;;  %v461_v0 = vsel %vm429_vm6, %v413_v48, %v445_v54  ;;  %v469_v1 = vsel %vm437_vm7, %v421_v49, %v453_v55  ;;  %v711_v2 = vpop.f32.mrb[6].mxu0  ;;  %v719_v3 = vpop.f32.mrb[6].mxu1 }
 0x14c   :  { %v628_v4 = vpack.c.bf16 %v461_v0, %v460_v46  ;;  %v648_v5 = vpack.c.bf16 %v469_v1, %v468_v47  ;;  %v418_v6 = vadd.f32 %v972_v18, %v395_v58  ;;  %v426_v7 = vadd.f32 %v972_v18, %v403_v59  ;;  %v287_v8 = vpop.f32.mrb[7].mxu0  ;;  %v319_v9 = vpop.f32.mrb[7].mxu1 }
 0x14d   :  { %665 = vst [vmem:[#allocation11 + $0x8] sm:$0xff] %v633_v62   ;;  %669 = vst [vmem:[#allocation11 + $0x28] sm:$0xff] %v653_v63   ;;  %v393_v10 = vmul.f32 %v970_v16, %v284_v60  ;;  %v401_v11 = vmul.f32 %v970_v16, %v316_v61  ;;  %v396_v12 = vmul.f32 %v711_v2, %v970_v16 }
 0x14e   :  { %v404_v13 = vmul.f32 %v719_v3, %v970_v16  ;;  %629 = vst [vmem:[#allocation11] sm:$0xff] %v628_v4   ;;  %668 = vst [vmem:[#allocation11 + $0x20] sm:$0xff] %v648_v5   ;;  %vm434_vm8 = vcmp.ge.f32.partialorder %v418_v6, 0.0  ;;  %v450_v14 = vmul.f32 0.2, %v418_v6  ;;  %vm442_vm9 = vcmp.ge.f32.partialorder %v426_v7, 0.0 }
 0x14f   :  { %v458_v15 = vmul.f32 0.2, %v426_v7  ;;  %v416_v17 = vadd.f32 %v972_v18, %v393_v10  ;;  %v419_v19 = vadd.f32 %v972_v18, %v396_v12  ;;  %v424_v21 = vadd.f32 %v972_v18, %v401_v11 }
 0x150   :  { %v427_v20 = vadd.f32 %v972_v18, %v404_v13  ;;  %v394_v22 = vmul.f32 %v970_v16, %v287_v8  ;;  %v402_v23 = vmul.f32 %v970_v16, %v319_v9  ;;  %v466_v24 = vsel %vm434_vm8, %v418_v6, %v450_v14 }
 0x151   :  { %v474_v25 = vsel %vm442_vm9, %v426_v7, %v458_v15  ;;  %vm435_vm10 = vcmp.ge.f32.partialorder %v419_v19, 0.0  ;;  %v451_v26 = vmul.f32 0.2, %v419_v19  ;;  %vm432_vm12 = vcmp.ge.f32.partialorder %v416_v17, 0.0 }
 0x152   :  { %vm443_vm11 = vcmp.ge.f32.partialorder %v427_v20, 0.0  ;;  %v459_v27 = vmul.f32 0.2, %v427_v20  ;;  %v448_v28 = vmul.f32 0.2, %v416_v17  ;;  %v417_v29 = vadd.f32 %v972_v18, %v394_v22 }
 0x153   :  { %v425_v30 = vadd.f32 %v972_v18, %v402_v23  ;;  %vm440_vm13 = vcmp.ge.f32.partialorder %v424_v21, 0.0  ;;  %v456_v31 = vmul.f32 0.2, %v424_v21  ;;  %v467_v32 = vsel %vm435_vm10, %v419_v19, %v451_v26 }
 0x154   :  { %v475_v33 = vsel %vm443_vm11, %v427_v20, %v459_v27  ;;  %v643_v34 = vpack.c.bf16 %v467_v32, %v466_v24  ;;  %vm433_vm14 = vcmp.ge.f32.partialorder %v417_v29, 0.0  ;;  %v449_v16 = vmul.f32 0.2, %v417_v29 }
 0x155   :  { %v663_v35 = vpack.c.bf16 %v475_v33, %v474_v25  ;;  %vm441_vm15 = vcmp.ge.f32.partialorder %v425_v30, 0.0  ;;  %v457_v36 = vmul.f32 0.2, %v425_v30  ;;  %v464_v37 = vsel %vm432_vm12, %v416_v17, %v448_v28 }
 0x156   :  { %667 = vst [vmem:[#allocation11 + $0x18] sm:$0xff] %v643_v34   ;;  %v465_v38 = vsel %vm433_vm14, %v417_v29, %v449_v16  ;;  %v472_v39 = vsel %vm440_vm13, %v424_v21, %v456_v31 }
 0x157   :  { %671 = vst [vmem:[#allocation11 + $0x38] sm:$0xff] %v663_v35   ;;  %v638_v18 = vpack.c.bf16 %v465_v38, %v464_v37  ;;  %v473_v40 = vsel %vm441_vm15, %v425_v30, %v457_v36 }
 0x158   :  { %v658_v41 = vpack.c.bf16 %v473_v40, %v472_v39 }
 0x159   :  { %666 = vst [vmem:[#allocation11 + $0x10] sm:$0xff] %v638_v18  }
 0x15a   :  { %670 = vst [vmem:[#allocation11 + $0x30] sm:$0xff] %v658_v41  }
 0x15b   :  { %858 = shalt.err (!%p855_p8)
}
 0x15c   :  { %s859_s17 = scalar_lea.hbm %s1027_s4, 1024 }
 0x15d   :  { %p860_p9 = scmp.ne.s32.totalorder %s1027_s4, %s859_s17  ;;  %p863_p10 = scmp.lt.u32.totalorder %s859_s17, %s1027_s4 }
 0x15f   :  { %p865_p11 = pnand %p863_p10, %p860_p9 }
 0x161   :  { %868 = shalt.err (!%p865_p11)
}
 0x162   :  { %567 = dma.vmem_to_hbm [thread:$0]  %s562_s13, 1024, %s1027_s4, [#allocation5], %s879_s27, %s879_s27, %s880_s28  }
 0x163   :  { %875 = dma.done.wait [#allocation5], 1024  }
 0x164   :  { %876 = vsyncadd [#allocation5], 4294966272 }
 0x165   :  { %571 = vsyncpa [#allocation4], 1 }
 0x166   :  { %572 = vsyncpa [#allocation7], 1 }
 0x167   :  { %573 = vsyncpa [#allocation10], 1 }
 0x168   :  { %574 = vsyncpa [#allocation5], 1 }

// kernel: _lambda_.7
= control target key start
LH: loop header
LB: loop body
LE: loop exit
PB: predicated region body
PF: predicated region fallthrough
CT: control target
= control target key end

     0   :  { %9 = vsyncpa [#allocation4], 0  ;;  %s705_s0 = inlined_call_operand.hbm [shape: bf16[32,256], index: 0, kind: input, shape index: {}]   ;;  %s706_s1 = inlined_call_operand.hbm [shape: bf16[256,128], index: 1, kind: input, shape index: {}]   ;;  %s707_s2 = inlined_call_operand.hbm [shape: f32[1,128], index: 2, kind: input, shape index: {}]   ;;  %s708_s3 = inlined_call_operand.hbm [shape: f32[1,128], index: 3, kind: input, shape index: {}]   ;;  %s709_s4 = inlined_call_operand.hbm [shape: bf16[32,128], index: 4, kind: output, shape index: {}]  }
   0x1   :  { %10 = vsyncpa [#allocation7], 0 }
   0x2   :  { %11 = vsyncpa [#allocation10], 0 }
   0x3   :  { %12 = vsyncpa [#allocation5], 0  ;;  %s605_s15 = smov [#allocation6]   ;;  %s487_s19 = scalar_lea.hbm %s706_s1, 2048 }
   0x4   :  { %s30_s16 = sshll.u32 %s605_s15, 4  ;;  %p488_p0 = scmp.ne.s32.totalorder %s706_s1, %s487_s19  ;;  %s31_s16 = int_to_ptr.vmem [resolvable:$true] %s30_s16 }
   0x5   :  { %p491_p1 = scmp.lt.u32.totalorder %s487_s19, %s706_s1 }
   0x7   :  { %p493_p2 = pnand %p491_p1, %p488_p0 }
   0x9   :  { %496 = shalt.err (!%p493_p2)
}
   0xa   :  { %s497_s24 = scalar_lea.vmem %s31_s16, 2048  ;;  %p502_p4 = scmp.lt.s32.totalorder %s31_s16, %s31_s16 }
   0xb   :  { %p498_p3 = scmp.ne.s32.totalorder %s31_s16, %s497_s24  ;;  %p503_p5 = scmp.lt.s32.totalorder %s497_s24, %s497_s24 }
   0xd   :  { %p504_p6 = por %p503_p5, %p502_p4 }
   0xf   :  { %p505_p7 = pnand %p504_p6, %p498_p3 }
  0x11   :  { %508 = shalt.err (!%p505_p7)
}
  0x12   :  { %s606_s25 = smov 64   ;;  %s607_s26 = smov 4  }
  0x13   :  { %36 = dma.hbm_to_vmem [thread:$0]  %s706_s1, 2048, %s31_s16, [#allocation7], %s606_s25, %s606_s25, %s607_s26  }
  0x14   :  { %s608_s29 = smov [#allocation3]   ;;  %s509_s7 = scalar_lea.hbm %s705_s0, 512 }
  0x15   :  { %s18_s30 = sshll.u32 %s608_s29, 4  ;;  %p510_p8 = scmp.ne.s32.totalorder %s705_s0, %s509_s7  ;;  %s19_s30 = int_to_ptr.vmem [resolvable:$true] %s18_s30 }
  0x16   :  { %p513_p9 = scmp.lt.u32.totalorder %s509_s7, %s705_s0 }
  0x18   :  { %p515_p10 = pnand %p513_p9, %p510_p8 }
  0x1a   :  { %518 = shalt.err (!%p515_p10)
}
  0x1b   :  { %s519_s12 = scalar_lea.vmem %s19_s30, 512  ;;  %p524_p12 = scmp.lt.s32.totalorder %s19_s30, %s19_s30 }
  0x1c   :  { %p520_p11 = scmp.ne.s32.totalorder %s19_s30, %s519_s12  ;;  %p525_p13 = scmp.lt.s32.totalorder %s519_s12, %s519_s12 }
  0x1e   :  { %p526_p0 = por %p525_p13, %p524_p12 }
  0x20   :  { %p527_p1 = pnand %p526_p0, %p520_p11 }
  0x22   :  { %530 = shalt.err (!%p527_p1)
}
  0x23   :  { %s609_s1 = smov 128   ;;  %s610_s13 = smov 8  }
  0x24   :  { %24 = dma.hbm_to_vmem [thread:$0]  %s705_s0, 512, %s19_s30, [#allocation4], %s609_s1, %s609_s1, %s610_s13  }
  0x25   :  { %s611_s16 = smov [#allocation8]   ;;  %s612_s18 = smov [#allocation9]  }
  0x26   :  { %s43_s17 = sshll.u32 %s611_s16, 4  ;;  %s53_s19 = sshll.u32 %s612_s18, 4  ;;  %s44_s17 = int_to_ptr.vmem [resolvable:$true] %s43_s17  ;;  %s54_s19 = int_to_ptr.vmem [resolvable:$true] %s53_s19 }
  0x27   :  { %s531_s22 = scalar_lea.hbm %s707_s2, 16 }
  0x28   :  { %p532_p2 = scmp.ne.s32.totalorder %s707_s2, %s531_s22  ;;  %p535_p3 = scmp.lt.u32.totalorder %s531_s22, %s707_s2 }
  0x2a   :  { %p537_p4 = pnand %p535_p3, %p532_p2 }
  0x2c   :  { %540 = shalt.err (!%p537_p4)
}
  0x2d   :  { %s541_s0 = scalar_lea.vmem %s44_s17, 16  ;;  %s545_s29 = scalar_lea.vmem %s44_s17, 32 }
  0x2e   :  { %p542_p5 = scmp.ne.s32.totalorder %s44_s17, %s541_s0  ;;  %p546_p6 = scmp.lt.s32.totalorder %s44_s17, %s44_s17 }
  0x2f   :  { %p547_p7 = scmp.lt.s32.totalorder %s545_s29, %s541_s0 }
  0x31   :  { %p548_p8 = por %p547_p7, %p546_p6 }
  0x33   :  { %p549_p9 = pnand %p548_p8, %p542_p5 }
  0x35   :  { %552 = shalt.err (!%p549_p9)
}
  0x36   :  { %46 = dma.hbm_to_vmem [thread:$0]  %s707_s2, 16, %s44_s17, [#allocation7]  }
  0x37   :  { %s553_s8 = scalar_lea.hbm %s708_s3, 16 }
  0x38   :  { %p554_p10 = scmp.ne.s32.totalorder %s708_s3, %s553_s8  ;;  %p557_p11 = scmp.lt.u32.totalorder %s553_s8, %s708_s3 }
  0x3a   :  { %p559_p12 = pnand %p557_p11, %p554_p10 }
  0x3c   :  { %562 = shalt.err (!%p559_p12)
}
  0x3d   :  { %s563_s1 = scalar_lea.vmem %s54_s19, 16  ;;  %s567_s13 = scalar_lea.vmem %s54_s19, 32 }
  0x3e   :  { %p564_p13 = scmp.ne.s32.totalorder %s54_s19, %s563_s1  ;;  %p568_p0 = scmp.lt.s32.totalorder %s54_s19, %s54_s19 }
  0x3f   :  { %p569_p1 = scmp.lt.s32.totalorder %s567_s13, %s563_s1 }
  0x41   :  { %p570_p2 = por %p569_p1, %p568_p0 }
  0x43   :  { %p571_p3 = pnand %p570_p2, %p564_p13 }
  0x45   :  { %574 = shalt.err (!%p571_p3)
}
  0x46   :  { %56 = dma.hbm_to_vmem [thread:$0]  %s708_s3, 16, %s54_s19, [#allocation10]  }
  0x47   :  { %597 = dma.done.wait [#allocation4], 512  }
  0x48   :  { %598 = vsyncadd [#allocation4], 4294966784 }
  0x49   :  { %599 = dma.done.wait [#allocation7], 2064  }
  0x4a   :  { %600 = vsyncadd [#allocation7], 4294965232 }
  0x4b   :  { %601 = dma.done.wait [#allocation10], 16  }
  0x4c   :  { %602 = vsyncadd [#allocation10], 4294967280  ;;  %v465_v0 = vld [vmem:[#allocation6 + $0x40] sm:$0xff]   ;;  %v467_v2 = vld [vmem:[#allocation6 + $0x48] sm:$0xff]   ;;  %s613_s3 = smov [#allocation11]  }
  0x4d   :  { %v466_v1 = vld [vmem:[#allocation6] sm:$0xff]   ;;  %412 = vmatprep.subr.bf16.mxu0 %v465_v0  ;;  %440 = vmatprep.subr.bf16.mxu1 %v465_v0  ;;  %v468_v3 = vld [vmem:[#allocation6 + $0x8] sm:$0xff]   ;;  %v469_v4 = vld [vmem:[#allocation6 + $0x50] sm:$0xff]   ;;  %s357_s15 = sshll.u32 %s613_s3, 4  ;;  %s358_s15 = int_to_ptr.vmem [resolvable:$true] %s357_s15 }
  0x4e   :  { %413 = vmatpush3.bf16.msra.mxu0 %v466_v1  ;;  %448 = vmatpush3.bf16.msra.mxu1 %v466_v1  ;;  %v470_v5 = vld [vmem:[#allocation6 + $0x10] sm:$0xff]   ;;  %v471_v6 = vld [vmem:[#allocation6 + $0x58] sm:$0xff]   ;;  %v473_v8 = vld [vmem:[#allocation6 + $0x60] sm:$0xff]   ;;  %s575_s16 = scalar_lea.vmem %s358_s15, 256  ;;  %p580_p5 = scmp.lt.s32.totalorder %s358_s15, %s358_s15 }
  0x4f   :  { %414 = vmatprep.subr.bf16.mxu0 %v467_v2  ;;  %441 = vmatprep.subr.bf16.mxu1 %v467_v2  ;;  %v472_v7 = vld [vmem:[#allocation6 + $0x18] sm:$0xff]   ;;  %v474_v9 = vld [vmem:[#allocation6 + $0x20] sm:$0xff]   ;;  %v475_v10 = vld [vmem:[#allocation6 + $0x68] sm:$0xff]   ;;  %p576_p4 = scmp.ne.s32.totalorder %s358_s15, %s575_s16  ;;  %p581_p6 = scmp.lt.s32.totalorder %s575_s16, %s575_s16 }
  0x50   :  { %v483_v11 = vld [vmem:[#allocation3 + $0x4] ss:$8 sps:$4 sm:$0xff]   ;;  %v486_v12 = vld [vmem:[#allocation3 + $0x14] ss:$8 sps:$4 sm:$0xff]   ;;  %v481_v18 = vld [vmem:[#allocation3] ss:$8 sps:$4 sm:$0xff]  }
  0x51   :  { %v476_v13 = vld [vmem:[#allocation6 + $0x28] sm:$0xff]   ;;  %v477_v14 = vld [vmem:[#allocation6 + $0x70] sm:$0xff]   ;;  %266 = vmatprep.mubr.bf16.mxu0 %v483_v11  ;;  %274 = vmatprep.mubr.bf16.mxu1 %v486_v12  ;;  %v479_v16 = vld [vmem:[#allocation6 + $0x78] sm:$0xff]   ;;  %p582_p7 = por %p581_p6, %p580_p5 }
  0x52   :  { %415 = vmatpush3.bf16.msra.mxu0 %v468_v3  ;;  %449 = vmatpush3.bf16.msra.mxu1 %v468_v3  ;;  %v478_v15 = vld [vmem:[#allocation6 + $0x30] sm:$0xff]   ;;  %v480_v17 = vld [vmem:[#allocation6 + $0x38] sm:$0xff]   ;;  %v391_v23 = vld [vmem:[#allocation8] ss:$0 sm:$0xff] }
  0x53   :  { %416 = vmatprep.subr.bf16.mxu0 %v469_v4  ;;  %442 = vmatprep.subr.bf16.mxu1 %v469_v4  ;;  %v484_v19 = vld [vmem:[#allocation3 + $0x10] ss:$8 sps:$4 sm:$0xff]   ;;  %v392_v29 = vld [vmem:[#allocation9] ss:$0 sm:$0xff]  ;;  %p583_p8 = pnand %p582_p7, %p576_p4 }
  0x56   :  { %417 = vmatpush3.bf16.msra.mxu0 %v470_v5  ;;  %450 = vmatpush3.bf16.msra.mxu1 %v470_v5 }
  0x57   :  { %418 = vmatprep.subr.bf16.mxu0 %v471_v6  ;;  %443 = vmatprep.subr.bf16.mxu1 %v471_v6 }
  0x5a   :  { %419 = vmatpush3.bf16.msra.mxu0 %v472_v7  ;;  %451 = vmatpush3.bf16.msra.mxu1 %v472_v7 }
  0x5b   :  { %420 = vmatprep.subr.bf16.mxu0 %v473_v8  ;;  %444 = vmatprep.subr.bf16.mxu1 %v473_v8 }
  0x5e   :  { %421 = vmatpush3.bf16.msra.mxu0 %v474_v9  ;;  %452 = vmatpush3.bf16.msra.mxu1 %v474_v9 }
  0x5f   :  { %422 = vmatprep.subr.bf16.mxu0 %v475_v10  ;;  %445 = vmatprep.subr.bf16.mxu1 %v475_v10 }
  0x62   :  { %423 = vmatpush3.bf16.msra.mxu0 %v476_v13  ;;  %453 = vmatpush3.bf16.msra.mxu1 %v476_v13 }
  0x63   :  { %424 = vmatprep.subr.bf16.mxu0 %v477_v14  ;;  %446 = vmatprep.subr.bf16.mxu1 %v477_v14 }
  0x66   :  { %425 = vmatpush3.bf16.msra.mxu0 %v478_v15  ;;  %454 = vmatpush3.bf16.msra.mxu1 %v478_v15 }
  0x67   :  { %426 = vmatprep.subr.bf16.mxu0 %v479_v16  ;;  %447 = vmatprep.subr.bf16.mxu1 %v479_v16 }
  0x6a   :  { %427 = vmatpush3.bf16.msra.mxu0 %v480_v17  ;;  %455 = vmatpush3.bf16.msra.mxu1 %v480_v17 }
  0x6d   :  { %267 = vmatmul.mubr.bf16.vlgmr.msra.gmra.mrb[0].mxu0 %v481_v18  ;;  %275 = vmatmul.mubr.bf16.vlgmr.msra.gmra.mrb[0].mxu1 %v484_v19 }
 0x140   :  { %v428_v20 = vpop.f32.mrb[0].mxu0  ;;  %v434_v21 = vpop.f32.mrb[0].mxu1 }
 0x141   :  { %v429_v22 = vpop.f32.mrb[1].mxu0  ;;  %v435_v24 = vpop.f32.mrb[1].mxu1 }
 0x142   :  { %v430_v25 = vadd.f32 %v429_v22, %v428_v20  ;;  %v436_v26 = vadd.f32 %v435_v24, %v434_v21  ;;  %v431_v27 = vpop.f32.mrb[2].mxu0  ;;  %v437_v28 = vpop.f32.mrb[2].mxu1 }
 0x143   :  { %v432_v30 = vpop.f32.mrb[3].mxu0  ;;  %v438_v31 = vpop.f32.mrb[3].mxu1 }
 0x144   :  { %v305_v32 = vmul.f32 %v430_v25, %v391_v23  ;;  %v307_v33 = vmul.f32 %v436_v26, %v391_v23  ;;  %v433_v34 = vadd.f32 %v432_v30, %v431_v27  ;;  %v439_v35 = vadd.f32 %v438_v31, %v437_v28 }
 0x146   :  { %v316_v36 = vadd.f32 %v392_v29, %v305_v32  ;;  %v318_v37 = vadd.f32 %v392_v29, %v307_v33  ;;  %v306_v38 = vmul.f32 %v433_v34, %v391_v23  ;;  %v308_v39 = vmul.f32 %v439_v35, %v391_v23 }
 0x148   :  { %v324_v40 = vmul.f32 0.2, %v316_v36  ;;  %v326_v41 = vmul.f32 0.2, %v318_v37  ;;  %v317_v42 = vadd.f32 %v392_v29, %v306_v38  ;;  %v319_v43 = vadd.f32 %v392_v29, %v308_v39 }
 0x149   :  { %vm320_vm0 = vcmp.ge.f32.partialorder %v316_v36, 0.0  ;;  %vm322_vm1 = vcmp.ge.f32.partialorder %v318_v37, 0.0 }
 0x14a   :  { %v325_v44 = vmul.f32 0.2, %v317_v42  ;;  %v327_v45 = vmul.f32 0.2, %v319_v43  ;;  %vm321_vm2 = vcmp.ge.f32.partialorder %v317_v42, 0.0  ;;  %vm323_vm3 = vcmp.ge.f32.partialorder %v319_v43, 0.0 }
 0x14b   :  { %v328_v46 = vsel %vm320_vm0, %v316_v36, %v324_v40  ;;  %v330_v48 = vsel %vm322_vm1, %v318_v37, %v326_v41 }
 0x14c   :  { %v329_v47 = vsel %vm321_vm2, %v317_v42, %v325_v44  ;;  %v331_v49 = vsel %vm323_vm3, %v319_v43, %v327_v45 }
 0x14d   :  { %v404_v50 = vpack.c.bf16 %v329_v47, %v328_v46  ;;  %v409_v51 = vpack.c.bf16 %v331_v49, %v330_v48 }
 0x14f   :  { %405 = vst [vmem:[#allocation11] sm:$0xff] %v404_v50   ;;  %411 = vst [vmem:[#allocation11 + $0x8] sm:$0xff] %v409_v51  }
 0x150   :  { %586 = shalt.err (!%p583_p8)
}
 0x151   :  { %s587_s19 = scalar_lea.hbm %s709_s4, 256 }
 0x152   :  { %p588_p9 = scmp.ne.s32.totalorder %s709_s4, %s587_s19  ;;  %p591_p10 = scmp.lt.u32.totalorder %s587_s19, %s709_s4 }
 0x154   :  { %p593_p11 = pnand %p591_p10, %p588_p9 }
 0x156   :  { %596 = shalt.err (!%p593_p11)
}
 0x157   :  { %363 = dma.vmem_to_hbm [thread:$0]  %s358_s15, 256, %s709_s4, [#allocation5], %s606_s25, %s606_s25, %s607_s26  }
 0x158   :  { %603 = dma.done.wait [#allocation5], 256  }
 0x159   :  { %604 = vsyncadd [#allocation5], 4294967040 }
 0x15a   :  { %367 = vsyncpa [#allocation4], 1 }
 0x15b   :  { %368 = vsyncpa [#allocation7], 1 }
 0x15c   :  { %369 = vsyncpa [#allocation10], 1 }
 0x15d   :  { %370 = vsyncpa [#allocation5], 1 }

// kernel: _lambda_.8
= control target key start
LH: loop header
LB: loop body
LE: loop exit
PB: predicated region body
PF: predicated region fallthrough
CT: control target
= control target key end

     0   :  { %9 = vsyncpa [#allocation4], 0  ;;  %s960_s0 = inlined_call_operand.hbm [shape: bf16[32,512], index: 0, kind: input, shape index: {}]   ;;  %s961_s1 = inlined_call_operand.hbm [shape: bf16[512,128], index: 1, kind: input, shape index: {}]   ;;  %s962_s2 = inlined_call_operand.hbm [shape: f32[1,128], index: 2, kind: input, shape index: {}]   ;;  %s963_s3 = inlined_call_operand.hbm [shape: f32[1,128], index: 3, kind: input, shape index: {}]   ;;  %s964_s4 = inlined_call_operand.hbm [shape: bf16[32,128], index: 4, kind: output, shape index: {}]  }
   0x1   :  { %10 = vsyncpa [#allocation7], 0 }
   0x2   :  { %11 = vsyncpa [#allocation10], 0 }
   0x3   :  { %12 = vsyncpa [#allocation5], 0  ;;  %s860_s15 = smov [#allocation6]   ;;  %s742_s19 = scalar_lea.hbm %s961_s1, 4096 }
   0x4   :  { %s30_s16 = sshll.u32 %s860_s15, 4  ;;  %p743_p0 = scmp.ne.s32.totalorder %s961_s1, %s742_s19  ;;  %s31_s16 = int_to_ptr.vmem [resolvable:$true] %s30_s16 }
   0x5   :  { %p746_p1 = scmp.lt.u32.totalorder %s742_s19, %s961_s1 }
   0x7   :  { %p748_p2 = pnand %p746_p1, %p743_p0 }
   0x9   :  { %751 = shalt.err (!%p748_p2)
}
   0xa   :  { %s752_s24 = scalar_lea.vmem %s31_s16, 4096  ;;  %p757_p4 = scmp.lt.s32.totalorder %s31_s16, %s31_s16 }
   0xb   :  { %p753_p3 = scmp.ne.s32.totalorder %s31_s16, %s752_s24  ;;  %p758_p5 = scmp.lt.s32.totalorder %s752_s24, %s752_s24 }
   0xd   :  { %p759_p6 = por %p758_p5, %p757_p4 }
   0xf   :  { %p760_p7 = pnand %p759_p6, %p753_p3 }
  0x11   :  { %763 = shalt.err (!%p760_p7)
}
  0x12   :  { %s861_s25 = smov 64   ;;  %s862_s26 = smov 4  }
  0x13   :  { %36 = dma.hbm_to_vmem [thread:$0]  %s961_s1, 4096, %s31_s16, [#allocation7], %s861_s25, %s861_s25, %s862_s26  }
  0x14   :  { %s863_s29 = smov [#allocation3]   ;;  %s764_s7 = scalar_lea.hbm %s960_s0, 1024 }
  0x15   :  { %s18_s30 = sshll.u32 %s863_s29, 4  ;;  %p765_p8 = scmp.ne.s32.totalorder %s960_s0, %s764_s7  ;;  %s19_s30 = int_to_ptr.vmem [resolvable:$true] %s18_s30 }
  0x16   :  { %p768_p9 = scmp.lt.u32.totalorder %s764_s7, %s960_s0 }
  0x18   :  { %p770_p10 = pnand %p768_p9, %p765_p8 }
  0x1a   :  { %773 = shalt.err (!%p770_p10)
}
  0x1b   :  { %s774_s12 = scalar_lea.vmem %s19_s30, 1024  ;;  %p779_p12 = scmp.lt.s32.totalorder %s19_s30, %s19_s30 }
  0x1c   :  { %p775_p11 = scmp.ne.s32.totalorder %s19_s30, %s774_s12  ;;  %p780_p13 = scmp.lt.s32.totalorder %s774_s12, %s774_s12 }
  0x1e   :  { %p781_p0 = por %p780_p13, %p779_p12 }
  0x20   :  { %p782_p1 = pnand %p781_p0, %p775_p11 }
  0x22   :  { %785 = shalt.err (!%p782_p1)
}
  0x23   :  { %s864_s1 = smov 256   ;;  %s865_s13 = smov 16  }
  0x24   :  { %24 = dma.hbm_to_vmem [thread:$0]  %s960_s0, 1024, %s19_s30, [#allocation4], %s864_s1, %s864_s1, %s865_s13  }
  0x25   :  { %s866_s16 = smov [#allocation8]   ;;  %s867_s18 = smov [#allocation9]  }
  0x26   :  { %s43_s17 = sshll.u32 %s866_s16, 4  ;;  %s53_s19 = sshll.u32 %s867_s18, 4  ;;  %s44_s17 = int_to_ptr.vmem [resolvable:$true] %s43_s17  ;;  %s54_s19 = int_to_ptr.vmem [resolvable:$true] %s53_s19 }
  0x27   :  { %s786_s22 = scalar_lea.hbm %s962_s2, 16 }
  0x28   :  { %p787_p2 = scmp.ne.s32.totalorder %s962_s2, %s786_s22  ;;  %p790_p3 = scmp.lt.u32.totalorder %s786_s22, %s962_s2 }
  0x2a   :  { %p792_p4 = pnand %p790_p3, %p787_p2 }
  0x2c   :  { %795 = shalt.err (!%p792_p4)
}
  0x2d   :  { %s796_s0 = scalar_lea.vmem %s44_s17, 16  ;;  %s800_s29 = scalar_lea.vmem %s44_s17, 32 }
  0x2e   :  { %p797_p5 = scmp.ne.s32.totalorder %s44_s17, %s796_s0  ;;  %p801_p6 = scmp.lt.s32.totalorder %s44_s17, %s44_s17 }
  0x2f   :  { %p802_p7 = scmp.lt.s32.totalorder %s800_s29, %s796_s0 }
  0x31   :  { %p803_p8 = por %p802_p7, %p801_p6 }
  0x33   :  { %p804_p9 = pnand %p803_p8, %p797_p5 }
  0x35   :  { %807 = shalt.err (!%p804_p9)
}
  0x36   :  { %46 = dma.hbm_to_vmem [thread:$0]  %s962_s2, 16, %s44_s17, [#allocation7]  }
  0x37   :  { %s808_s8 = scalar_lea.hbm %s963_s3, 16 }
  0x38   :  { %p809_p10 = scmp.ne.s32.totalorder %s963_s3, %s808_s8  ;;  %p812_p11 = scmp.lt.u32.totalorder %s808_s8, %s963_s3 }
  0x3a   :  { %p814_p12 = pnand %p812_p11, %p809_p10 }
  0x3c   :  { %817 = shalt.err (!%p814_p12)
}
  0x3d   :  { %s818_s1 = scalar_lea.vmem %s54_s19, 16  ;;  %s822_s13 = scalar_lea.vmem %s54_s19, 32 }
  0x3e   :  { %p819_p13 = scmp.ne.s32.totalorder %s54_s19, %s818_s1  ;;  %p823_p0 = scmp.lt.s32.totalorder %s54_s19, %s54_s19 }
  0x3f   :  { %p824_p1 = scmp.lt.s32.totalorder %s822_s13, %s818_s1 }
  0x41   :  { %p825_p2 = por %p824_p1, %p823_p0 }
  0x43   :  { %p826_p3 = pnand %p825_p2, %p819_p13 }
  0x45   :  { %829 = shalt.err (!%p826_p3)
}
  0x46   :  { %56 = dma.hbm_to_vmem [thread:$0]  %s963_s3, 16, %s54_s19, [#allocation10]  }
  0x47   :  { %852 = dma.done.wait [#allocation4], 1024  }
  0x48   :  { %853 = vsyncadd [#allocation4], 4294966272 }
  0x49   :  { %854 = dma.done.wait [#allocation7], 4112  }
  0x4a   :  { %855 = vsyncadd [#allocation7], 4294963184 }
  0x4b   :  { %856 = dma.done.wait [#allocation10], 16  }
  0x4c   :  { %857 = vsyncadd [#allocation10], 4294967280  ;;  %v698_v0 = vld [vmem:[#allocation6 + $0x40] sm:$0xff]   ;;  %v702_v4 = vld [vmem:[#allocation6 + $0x48] sm:$0xff]   ;;  %s868_s3 = smov [#allocation11]  }
  0x4d   :  { %v699_v1 = vld [vmem:[#allocation6 + $0xc0] sm:$0xff]   ;;  %633 = vmatprep.subr.bf16.mxu0 %v698_v0  ;;  %v703_v5 = vld [vmem:[#allocation6 + $0xc8] sm:$0xff]   ;;  %v706_v8 = vld [vmem:[#allocation6 + $0x50] sm:$0xff]   ;;  %s558_s15 = sshll.u32 %s868_s3, 4  ;;  %s559_s15 = int_to_ptr.vmem [resolvable:$true] %s558_s15 }
  0x4e   :  { %v700_v2 = vld [vmem:[#allocation6] sm:$0xff]   ;;  %661 = vmatprep.subr.bf16.mxu1 %v699_v1  ;;  %v704_v6 = vld [vmem:[#allocation6 + $0x8] sm:$0xff]   ;;  %v707_v9 = vld [vmem:[#allocation6 + $0xd0] sm:$0xff]   ;;  %s830_s16 = scalar_lea.vmem %s559_s15, 256  ;;  %p835_p5 = scmp.lt.s32.totalorder %s559_s15, %s559_s15 }
  0x4f   :  { %v701_v3 = vld [vmem:[#allocation6 + $0x80] sm:$0xff]   ;;  %634 = vmatpush3.bf16.msra.mxu0 %v700_v2  ;;  %v705_v7 = vld [vmem:[#allocation6 + $0x88] sm:$0xff]   ;;  %v708_v10 = vld [vmem:[#allocation6 + $0x10] sm:$0xff]   ;;  %p831_p4 = scmp.ne.s32.totalorder %s559_s15, %s830_s16  ;;  %p836_p6 = scmp.lt.s32.totalorder %s830_s16, %s830_s16 }
  0x50   :  { %662 = vmatpush3.bf16.msra.mxu1 %v701_v3  ;;  %635 = vmatprep.subr.bf16.mxu0 %v702_v4  ;;  %v709_v11 = vld [vmem:[#allocation6 + $0x90] sm:$0xff]   ;;  %v710_v12 = vld [vmem:[#allocation6 + $0x58] sm:$0xff]   ;;  %v714_v16 = vld [vmem:[#allocation6 + $0x60] sm:$0xff]  }
  0x51   :  { %663 = vmatprep.subr.bf16.mxu1 %v703_v5  ;;  %v711_v13 = vld [vmem:[#allocation6 + $0xd8] sm:$0xff]   ;;  %v715_v17 = vld [vmem:[#allocation6 + $0xe0] sm:$0xff]   ;;  %v718_v20 = vld [vmem:[#allocation6 + $0x68] sm:$0xff]   ;;  %p837_p7 = por %p836_p6, %p835_p5 }
  0x52   :  { %v712_v14 = vld [vmem:[#allocation6 + $0x18] sm:$0xff]   ;;  %v716_v18 = vld [vmem:[#allocation6 + $0x20] sm:$0xff]   ;;  %v719_v21 = vld [vmem:[#allocation6 + $0xe8] sm:$0xff]  }
  0x53   :  { %636 = vmatpush3.bf16.msra.mxu0 %v704_v6  ;;  %v713_v15 = vld [vmem:[#allocation6 + $0x98] sm:$0xff]   ;;  %v717_v19 = vld [vmem:[#allocation6 + $0xa0] sm:$0xff]   ;;  %v720_v22 = vld [vmem:[#allocation6 + $0x28] sm:$0xff]   ;;  %p838_p8 = pnand %p837_p7, %p831_p4 }
  0x54   :  { %664 = vmatpush3.bf16.msra.mxu1 %v705_v7  ;;  %637 = vmatprep.subr.bf16.mxu0 %v706_v8  ;;  %v721_v23 = vld [vmem:[#allocation6 + $0xa8] sm:$0xff]   ;;  %v722_v24 = vld [vmem:[#allocation6 + $0x70] sm:$0xff]   ;;  %v726_v28 = vld [vmem:[#allocation6 + $0x78] sm:$0xff]  }
  0x55   :  { %665 = vmatprep.subr.bf16.mxu1 %v707_v9  ;;  %v723_v25 = vld [vmem:[#allocation6 + $0xf0] sm:$0xff]   ;;  %v727_v29 = vld [vmem:[#allocation6 + $0xf8] sm:$0xff]   ;;  %v612_v49 = vld [vmem:[#allocation8] ss:$0 sm:$0xff] }
  0x56   :  { %v724_v26 = vld [vmem:[#allocation6 + $0x30] sm:$0xff]   ;;  %v728_v30 = vld [vmem:[#allocation6 + $0x38] sm:$0xff]   ;;  %v613_v54 = vld [vmem:[#allocation9] ss:$0 sm:$0xff] }
  0x57   :  { %638 = vmatpush3.bf16.msra.mxu0 %v708_v10  ;;  %v725_v27 = vld [vmem:[#allocation6 + $0xb0] sm:$0xff]   ;;  %v729_v31 = vld [vmem:[#allocation6 + $0xb8] sm:$0xff]  }
  0x58   :  { %666 = vmatpush3.bf16.msra.mxu1 %v709_v11  ;;  %639 = vmatprep.subr.bf16.mxu0 %v710_v12  ;;  %v730_v32 = vld [vmem:[#allocation3] ss:$16 sps:$4 sm:$0xff]   ;;  %v732_v33 = vld [vmem:[#allocation3 + $0x4] ss:$16 sps:$4 sm:$0xff]   ;;  %v733_v34 = vld [vmem:[#allocation3 + $0x8] ss:$16 sps:$4 sm:$0xff]  }
  0x59   :  { %667 = vmatprep.subr.bf16.mxu1 %v711_v13  ;;  %v735_v35 = vld [vmem:[#allocation3 + $0xc] ss:$16 sps:$4 sm:$0xff]   ;;  %418 = vmatprep.mubr.bf16.mxu0 %v732_v33  ;;  %v736_v36 = vld [vmem:[#allocation3 + $0x24] ss:$16 sps:$4 sm:$0xff]   ;;  %v740_v38 = vld [vmem:[#allocation3 + $0x20] ss:$16 sps:$4 sm:$0xff]  }
  0x5a   :  { %467 = vmatprep.mubr.bf16.mxu1 %v735_v35  ;;  %v738_v37 = vld [vmem:[#allocation3 + $0x2c] ss:$16 sps:$4 sm:$0xff]   ;;  %v741_v39 = vld [vmem:[#allocation3 + $0x28] ss:$16 sps:$4 sm:$0xff]  }
  0x5b   :  { %640 = vmatpush3.bf16.msra.mxu0 %v712_v14 }
  0x5c   :  { %668 = vmatpush3.bf16.msra.mxu1 %v713_v15  ;;  %641 = vmatprep.subr.bf16.mxu0 %v714_v16 }
  0x5d   :  { %669 = vmatprep.subr.bf16.mxu1 %v715_v17 }
  0x5f   :  { %642 = vmatpush3.bf16.msra.mxu0 %v716_v18 }
  0x60   :  { %670 = vmatpush3.bf16.msra.mxu1 %v717_v19  ;;  %643 = vmatprep.subr.bf16.mxu0 %v718_v20 }
  0x61   :  { %671 = vmatprep.subr.bf16.mxu1 %v719_v21 }
  0x63   :  { %644 = vmatpush3.bf16.msra.mxu0 %v720_v22 }
  0x64   :  { %672 = vmatpush3.bf16.msra.mxu1 %v721_v23  ;;  %645 = vmatprep.subr.bf16.mxu0 %v722_v24 }
  0x65   :  { %673 = vmatprep.subr.bf16.mxu1 %v723_v25 }
  0x67   :  { %646 = vmatpush3.bf16.msra.mxu0 %v724_v26 }
  0x68   :  { %674 = vmatpush3.bf16.msra.mxu1 %v725_v27  ;;  %647 = vmatprep.subr.bf16.mxu0 %v726_v28 }
  0x69   :  { %675 = vmatprep.subr.bf16.mxu1 %v727_v29 }
  0x6b   :  { %648 = vmatpush3.bf16.msra.mxu0 %v728_v30 }
  0x6c   :  { %676 = vmatpush3.bf16.msra.mxu1 %v729_v31 }
  0x6e   :  { %419 = vmatmul.mubr.bf16.vlgmr.msra.gmra.mrb[0].mxu0 %v730_v32 }
  0x6f   :  { %468 = vmatmul.mubr.bf16.vlgmr.msra.gmra.mrb[0].mxu1 %v733_v34  ;;  %426 = vmatprep.mubr.bf16.mxu0 %v736_v36 }
  0x70   :  { %475 = vmatprep.mubr.bf16.mxu1 %v738_v37 }
  0x76   :  { %427 = vmatmul.mubr.bf16.gmra.mrb[4].mxu0 %v740_v38 }
  0x77   :  { %476 = vmatmul.mubr.bf16.gmra.mrb[4].mxu1 %v741_v39 }
 0x141   :  { %v649_v40 = vpop.f32.mrb[0].mxu0 }
 0x142   :  { %v677_v41 = vpop.f32.mrb[0].mxu1  ;;  %v650_v42 = vpop.f32.mrb[1].mxu0 }
 0x143   :  { %v651_v43 = vadd.f32 %v650_v42, %v649_v40  ;;  %v678_v44 = vpop.f32.mrb[1].mxu1  ;;  %v652_v45 = vpop.f32.mrb[2].mxu0 }
 0x144   :  { %v679_v46 = vadd.f32 %v678_v44, %v677_v41  ;;  %v680_v47 = vpop.f32.mrb[2].mxu1  ;;  %v653_v48 = vpop.f32.mrb[3].mxu0 }
 0x145   :  { %v654_v50 = vadd.f32 %v653_v48, %v652_v45  ;;  %v681_v51 = vpop.f32.mrb[3].mxu1 }
 0x146   :  { %v470_v52 = vadd.f32 %v679_v46, %v651_v43  ;;  %v682_v53 = vadd.f32 %v681_v51, %v680_v47 }
 0x148   :  { %v506_v55 = vmul.f32 %v612_v49, %v470_v52  ;;  %v473_v56 = vadd.f32 %v682_v53, %v654_v50 }
 0x149   :  { %v655_v57 = vpop.f32.mrb[4].mxu0 }
 0x14a   :  { %v517_v58 = vadd.f32 %v613_v54, %v506_v55  ;;  %v507_v59 = vmul.f32 %v612_v49, %v473_v56  ;;  %v683_v60 = vpop.f32.mrb[4].mxu1  ;;  %v656_v61 = vpop.f32.mrb[5].mxu0 }
 0x14b   :  { %v657_v62 = vadd.f32 %v656_v61, %v655_v57  ;;  %v684_v63 = vpop.f32.mrb[5].mxu1  ;;  %v658_v0 = vpop.f32.mrb[6].mxu0 }
 0x14c   :  { %v518_v1 = vadd.f32 %v613_v54, %v507_v59  ;;  %v685_v2 = vadd.f32 %v684_v63, %v683_v60  ;;  %v686_v3 = vpop.f32.mrb[6].mxu1  ;;  %v659_v4 = vpop.f32.mrb[7].mxu0  ;;  %v525_v5 = vmul.f32 0.2, %v517_v58  ;;  %vm521_vm0 = vcmp.ge.f32.partialorder %v517_v58, 0.0 }
 0x14d   :  { %v660_v6 = vadd.f32 %v659_v4, %v658_v0  ;;  %v687_v7 = vpop.f32.mrb[7].mxu1 }
 0x14e   :  { %v478_v8 = vadd.f32 %v685_v2, %v657_v62  ;;  %v688_v9 = vadd.f32 %v687_v7, %v686_v3  ;;  %vm522_vm1 = vcmp.ge.f32.partialorder %v518_v1, 0.0  ;;  %v526_v10 = vmul.f32 0.2, %v518_v1 }
 0x14f   :  { %v529_v13 = vsel %vm521_vm0, %v517_v58, %v525_v5 }
 0x150   :  { %v508_v11 = vmul.f32 %v612_v49, %v478_v8  ;;  %v481_v12 = vadd.f32 %v688_v9, %v660_v6  ;;  %v530_v14 = vsel %vm522_vm1, %v518_v1, %v526_v10 }
 0x151   :  { %v625_v15 = vpack.c.bf16 %v530_v14, %v529_v13 }
 0x152   :  { %v519_v16 = vadd.f32 %v613_v54, %v508_v11  ;;  %v509_v17 = vmul.f32 %v612_v49, %v481_v12 }
 0x153   :  { %626 = vst [vmem:[#allocation11] sm:$0xff] %v625_v15  }
 0x154   :  { %v520_v18 = vadd.f32 %v613_v54, %v509_v17  ;;  %v527_v19 = vmul.f32 0.2, %v519_v16  ;;  %vm523_vm2 = vcmp.ge.f32.partialorder %v519_v16, 0.0 }
 0x156   :  { %vm524_vm3 = vcmp.ge.f32.partialorder %v520_v18, 0.0  ;;  %v528_v20 = vmul.f32 0.2, %v520_v18  ;;  %v531_v21 = vsel %vm523_vm2, %v519_v16, %v527_v19 }
 0x158   :  { %v532_v22 = vsel %vm524_vm3, %v520_v18, %v528_v20 }
 0x159   :  { %v630_v23 = vpack.c.bf16 %v532_v22, %v531_v21 }
 0x15b   :  { %632 = vst [vmem:[#allocation11 + $0x8] sm:$0xff] %v630_v23  }
 0x15c   :  { %841 = shalt.err (!%p838_p8)
}
 0x15d   :  { %s842_s19 = scalar_lea.hbm %s964_s4, 256 }
 0x15e   :  { %p843_p9 = scmp.ne.s32.totalorder %s964_s4, %s842_s19  ;;  %p846_p10 = scmp.lt.u32.totalorder %s842_s19, %s964_s4 }
 0x160   :  { %p848_p11 = pnand %p846_p10, %p843_p9 }
 0x162   :  { %851 = shalt.err (!%p848_p11)
}
 0x163   :  { %564 = dma.vmem_to_hbm [thread:$0]  %s559_s15, 256, %s964_s4, [#allocation5], %s861_s25, %s861_s25, %s862_s26  }
 0x164   :  { %858 = dma.done.wait [#allocation5], 256  }
 0x165   :  { %859 = vsyncadd [#allocation5], 4294967040 }
 0x166   :  { %568 = vsyncpa [#allocation4], 1 }
 0x167   :  { %569 = vsyncpa [#allocation7], 1 }
 0x168   :  { %570 = vsyncpa [#allocation10], 1 }
 0x169   :  { %571 = vsyncpa [#allocation5], 1 }

// kernel: _lambda_.9
= control target key start
LH: loop header
LB: loop body
LE: loop exit
PB: predicated region body
PF: predicated region fallthrough
CT: control target
= control target key end

     0   :  { %s1633_s0 = inlined_call_operand.hbm [shape: bf16[16,1024], index: 0, kind: input, shape index: {}]   ;;  %s1634_s1 = inlined_call_operand.hbm [shape: bf16[1024,128], index: 1, kind: input, shape index: {}]   ;;  %s1635_s2 = inlined_call_operand.hbm [shape: f32[1,128], index: 2, kind: input, shape index: {}]   ;;  %s1636_s3 = inlined_call_operand.hbm [shape: f32[1,128], index: 3, kind: input, shape index: {}]   ;;  %s1637_s4 = inlined_call_operand.hbm [shape: f32[16,128], index: 4, kind: output, shape index: {}]  }
   0x1   :  { %1642 = sst [smem:[#allocation17_spill]] %s1633_s0 }
   0x2   :  { %1643 = sst [smem:[#allocation18_spill]] %s1635_s2 }
   0x3   :  { %9 = vsyncpa [#allocation4], 0 }
   0x4   :  { %11 = vsyncpa [#allocation4 + $0x1], 0 }
   0x5   :  { %12 = vsyncpa [#allocation7], 0 }
   0x6   :  { %14 = vsyncpa [#allocation7 + $0x1], 0 }
   0x7   :  { %15 = vsyncpa [#allocation10], 0 }
   0x8   :  { %16 = vsyncpa [#allocation5], 0  ;;  %s1340_s15 = smov 0   ;;  %s1342_s16 = smov 0  }
   0x9   :  { %s1344_s17 = smov 0   ;;  %s1346_s18 = smov 0  }
   0xa   :  { %s1348_s19 = smov 0   ;;  %s1350_s20 = smov 0  }
   0xb LB: > { %s1369_s21 = sadd.s32 4294967295, %s1300_s20   ;;  %s50_s22 = sadd.s32 1, %s1288_s17  ;;  %s1300_s20 = sphi %s1350_s20, %s22_s20   ;;  %s1296_s19 = sphi %s1348_s19, %s1661_s19   ;;  %s1292_s18 = sphi %s1346_s18, %s1660_s18   ;;  %s1288_s17 = sphi %s1344_s17, %s1659_s17   ;;  %s1284_s16 = sphi %s1342_s16, %s1658_s16   ;;  %s1280_s15 = sphi %s1340_s15, %s1657_s15  }
   0xc   : > { %p57_p0 = scmp.ne.s32.totalorder %s1288_s17, %s1284_s16  ;;  %p58_p1 = scmp.eq.s32.totalorder %s1300_s20, 0 }
   0xd   : > { %p63_p2 = scmp.ne.s32.totalorder %s1284_s16, %s1280_s15  ;;  %p1638_p3 = scmp.eq.s32.totalorder %s1369_s21, 0 }
   0xe   : > { %p59_p4 = por %p58_p1, %p57_p0  ;;  %p853_p5 = scmp.ge.s32.totalorder %s1300_s20, 1 }
   0xf   : > { %p1380_p6 = por %p1638_p3, %p63_p2  ;;  %p182_p7 = scmp.lt.s32.totalorder %s1300_s20, 3 }
  0x10   : > { %s1302_s25 = smov [#allocation8]   ;;  %p990_p10 = scmp.lt.s32.totalorder %s1300_s20, 2 }
  0x11   : > { %s1644_s23 = scalar_select %p1380_p6, 1, 0 }
  0x12   : > { %p1385_p8 = pnand %p853_p5, %p182_p7  ;;  %s197_s26 = sshll.u32 %s1302_s25, 4  ;;  %s198_s26 = int_to_ptr.vmem [resolvable:$true] %s197_s26 }
  0x13   : > { %p1398_p12 = pnand %p990_p10, %p59_p4  ;;  %s1303_s29 = smov [#allocation9]  }
  0x14   : > { %s1645_s24 = scalar_select %p1385_p8, 1, 0 }
  0x15   : > { %p974_p9 = pneg %p1385_p8  ;;  %s210_s30 = sshll.u32 %s1303_s29, 4  ;;  %s211_s30 = int_to_ptr.vmem [resolvable:$true] %s210_s30 }
  0x16   : > { %s1647_s28 = scalar_select %p1398_p12, 1, 0 }
  0x17   : > { %p1394_p11 = pnand %p974_p9, %p1638_p3  ;;  %s1648_s2 = sld [smem:[#allocation18_spill]] }
  0x19   : > { %p1094_p0 = pneg %p1394_p11 }
  0x1d   : > { %s1092_s7 = scalar_lea.hbm %s1648_s2, 16 }
  0x1e   : > { %p1093_p13 = scmp.ne.s32.totalorder %s1648_s2, %s1092_s7  ;;  %p1099_p4 = scmp.lt.u32.totalorder %s1092_s7, %s1648_s2 }
  0x20   : > { %p1095_p1 = pnand %p1094_p0, %p1093_p13 }
  0x22   : > { %p1096_p2 = pneg %p1095_p1 }
  0x24   : > { %p1101_p5 = pnand %p1099_p4, %p1096_p2 }
  0x26   : > { %1104 = shalt.err (!%p1101_p5)
}
  0x27   : > { %s1105_s12 = scalar_lea.vmem %s198_s26, 16  ;;  %s1112_s13 = scalar_lea.vmem %s198_s26, 32 }
  0x28   : > { %p1106_p7 = scmp.ne.s32.totalorder %s198_s26, %s1105_s12  ;;  %p1113_p3 = scmp.lt.s32.totalorder %s198_s26, %s198_s26 }
  0x29   : > { %p1114_p6 = scmp.lt.s32.totalorder %s1112_s13, %s1105_s12 }
  0x2a   : > { %p1108_p9 = pnand %p1106_p7, %p1094_p0 }
  0x2b   : > { %p1115_p8 = por %p1114_p6, %p1113_p3 }
  0x2c   : > { %p1109_p10 = pneg %p1108_p9 }
  0x2e   : > { %p1116_p12 = pnand %p1115_p8, %p1109_p10 }
  0x30   : > { %1119 = shalt.err (!%p1116_p12)
}
  0x31   : > { %977 = dma.hbm_to_vmem [thread:$0]  (!%p1394_p11), %s1648_s2, 16, %s198_s26, [#allocation7]  }
  0x32   : > { %s34_s25 = sadd.s32 1, %s1296_s19  ;;  %s1120_s6 = scalar_lea.hbm %s1636_s3, 16 }
  0x33   : > { %p1121_p3 = scmp.ne.s32.totalorder %s1636_s3, %s1120_s6  ;;  %p1127_p12 = scmp.lt.u32.totalorder %s1120_s6, %s1636_s3 }
  0x35   : > { %p1123_p6 = pnand %p1121_p3, %p1094_p0 }
  0x37   : > { %p1124_p8 = pneg %p1123_p6 }
  0x39   : > { %p1129_p13 = pnand %p1127_p12, %p1124_p8 }
  0x3b   : > { %1132 = shalt.err (!%p1129_p13)
}
  0x3c   : > { %s1133_s26 = scalar_lea.vmem %s211_s30, 16  ;;  %s1140_s11 = scalar_lea.vmem %s211_s30, 32 }
  0x3d   : > { %p1134_p1 = scmp.ne.s32.totalorder %s211_s30, %s1133_s26  ;;  %p1141_p5 = scmp.lt.s32.totalorder %s211_s30, %s211_s30 }
  0x3e   : > { %p1142_p7 = scmp.lt.s32.totalorder %s1140_s11, %s1133_s26 }
  0x3f   : > { %p1136_p2 = pnand %p1134_p1, %p1094_p0 }
  0x40   : > { %p1143_p9 = por %p1142_p7, %p1141_p5 }
  0x41   : > { %p1137_p4 = pneg %p1136_p2 }
  0x43   : > { %p1144_p10 = pnand %p1143_p9, %p1137_p4 }
  0x45   : > { %1147 = shalt.err (!%p1144_p10)
}
  0x46   : > { %980 = dma.hbm_to_vmem [thread:$0]  (!%p1394_p11), %s1636_s3, 16, %s211_s30, [#allocation10]  }
  0x47   : > { %p35_p0 = scmp.ge.s32.totalorder %s34_s25, 2  ;;  %s1446_s14 = sand.u32 1, %s1288_s17  }
  0x48   : > { %s857_s15 = sshll.u32 %s1446_s14, 5  ;;  %s912_s27 = sshll.u32 %s1296_s19, 8 }
  0x49   : > { %s1663_s25 = smov (%p35_p0, %s34_s25), 0  ;;  %s1649_s0 = sld [smem:[#allocation17_spill]] }
  0x4a   : > { %s46_s29 = ssub.s32 %s1296_s19, %s1663_s25  ;;  %s225_s30 = scalar_lea.vmem [#allocation3], %s857_s15 }
  0x4b   : > { %p48_p11 = scmp.eq.s32.totalorder %s46_s29, 0  ;;  %s235_s8 = sshll.u32 %s225_s30, 4  ;;  %s1459_s8 = int_to_ptr.vmem [resolvable:$true] %s235_s8 }
  0x4c   : > { %s222_s10 = scalar_lea.sflag [#allocation4], %s1446_s14  ;;  %p1650_p6 = scmp.ne.s32.totalorder %s1647_s28, 0 }
  0x4d   : > { %s1464_s9 = scalar_select %p48_p11, %s1288_s17, %s50_s22  }
  0x4e   : > { %p1150_p8 = pneg %p1650_p6 }
  0x4f   : > { %s1457_s7 = scalar_lea.hbm %s1649_s0, %s912_s27  ;;  %s1153_s13 = scalar_lea.hbm %s1649_s0, 1024 }
  0x50   : > { %s1148_s26 = scalar_lea.hbm %s1457_s7, 512  ;;  %p1154_p1 = scmp.lt.u32.totalorder %s1457_s7, %s1649_s0 }
  0x51   : > { %p1149_p3 = scmp.ne.s32.totalorder %s1457_s7, %s1148_s26  ;;  %p1155_p2 = scmp.lt.u32.totalorder %s1153_s13, %s1148_s26 }
  0x52   : > { %p1157_p5 = scmp.lt.u32.totalorder %s1148_s26, %s1457_s7 }
  0x53   : > { %p1151_p12 = pnand %p1150_p8, %p1149_p3  ;;  %p1156_p4 = por %p1155_p2, %p1154_p1 }
  0x55   : > { %p1152_p13 = pneg %p1151_p12  ;;  %p1158_p7 = por %p1157_p5, %p1156_p4 }
  0x57   : > { %p1159_p9 = pnand %p1158_p7, %p1152_p13 }
  0x59   : > { %1162 = shalt.err (!%p1159_p9)
}
  0x5a   : > { %s1163_s22 = scalar_lea.vmem %s1459_s8, 512  ;;  %s1304_s29 = smov [#allocation3]  }
  0x5b   : > { %p1164_p10 = scmp.ne.s32.totalorder %s1459_s8, %s1163_s22  ;;  %s1168_s5 = sshll.u32 %s1304_s29, 4  ;;  %s1169_s5 = int_to_ptr.vmem [resolvable:$false] %s1168_s5 }
  0x5c   : > { %s1170_s6 = scalar_lea.vmem %s1169_s5, 1024  ;;  %p1171_p3 = scmp.lt.s32.totalorder %s1459_s8, %s1169_s5 }
  0x5d   : > { %p1166_p0 = pnand %p1164_p10, %p1150_p8  ;;  %p1172_p12 = scmp.lt.s32.totalorder %s1170_s6, %s1163_s22 }
  0x5f   : > { %p1167_p11 = pneg %p1166_p0  ;;  %p1173_p1 = por %p1172_p12, %p1171_p3 }
  0x61   : > { %p1174_p2 = pnand %p1173_p1, %p1167_p11 }
  0x63   : > { %1177 = shalt.err (!%p1174_p2)
}
  0x64   : > { %s1305_s30 = smov 512   ;;  %s1306_s26 = smov 256  }
  0x65   : > { %s1307_s11 = smov 16   ;;  %s245_s12 = sand.u32 1, %s1300_s20  }
  0x66   : > { %984 = dma.hbm_to_vmem [thread:$0]  (!%p1650_p6), %s1457_s7, 512, %s1459_s8, %s222_s10, %s1305_s30, %s1306_s26, %s1307_s11  }
  0x67   : > { %s860_s13 = sshll.u32 %s1446_s14, 8  ;;  %s913_s15 = sshll.u32 %s1296_s19, 12 }
  0x68   : > { %s249_s27 = scalar_lea.vmem [#allocation6], %s860_s13  ;;  %s1500_s6 = scalar_lea.hbm %s1634_s1, %s913_s15 }
  0x69   : > { %s257_s22 = sshll.u32 %s249_s27, 4  ;;  %s1504_s0 = scalar_lea.sflag [#allocation7], %s245_s12  ;;  %s1502_s22 = int_to_ptr.vmem [resolvable:$true] %s257_s22 }
  0x6a   : > { %s1178_s2 = scalar_lea.hbm %s1500_s6, 4096  ;;  %s1183_s8 = scalar_lea.hbm %s1634_s1, 8192 }
  0x6b   : > { %p1179_p13 = scmp.ne.s32.totalorder %s1500_s6, %s1178_s2  ;;  %p1184_p7 = scmp.lt.u32.totalorder %s1500_s6, %s1634_s1 }
  0x6c   : > { %p1185_p9 = scmp.lt.u32.totalorder %s1183_s8, %s1178_s2  ;;  %p1187_p0 = scmp.lt.u32.totalorder %s1178_s2, %s1500_s6 }
  0x6d   : > { %p1181_p4 = pnand %p1179_p13, %p1150_p8 }
  0x6e   : > { %p1186_p10 = por %p1185_p9, %p1184_p7 }
  0x6f   : > { %p1182_p5 = pneg %p1181_p4 }
  0x70   : > { %p1188_p11 = por %p1187_p0, %p1186_p10 }
  0x72   : > { %p1189_p3 = pnand %p1188_p11, %p1182_p5 }
  0x74   : > { %1192 = shalt.err (!%p1189_p3)
}
  0x75   : > { %s1193_s26 = scalar_lea.vmem %s1502_s22, 4096  ;;  %s1308_s11 = smov [#allocation6]  }
  0x76   : > { %p1194_p12 = scmp.ne.s32.totalorder %s1502_s22, %s1193_s26  ;;  %s1198_s12 = sshll.u32 %s1308_s11, 4  ;;  %s1199_s12 = int_to_ptr.vmem [resolvable:$false] %s1198_s12 }
  0x77   : > { %s1200_s13 = scalar_lea.vmem %s1199_s12, 8192  ;;  %p1201_p13 = scmp.lt.s32.totalorder %s1502_s22, %s1199_s12 }
  0x78   : > { %p1196_p1 = pnand %p1194_p12, %p1150_p8  ;;  %p1202_p4 = scmp.lt.s32.totalorder %s1200_s13, %s1193_s26 }
  0x7a   : > { %p1197_p2 = pneg %p1196_p1  ;;  %p1203_p7 = por %p1202_p4, %p1201_p13 }
  0x7c   : > { %p1204_p9 = pnand %p1203_p7, %p1197_p2 }
  0x7e   : > { %1207 = shalt.err (!%p1204_p9)
}
  0x7f   : > { %s1309_s2 = smov 64   ;;  %s1310_s15 = smov 4  }
  0x80   : > { %987 = dma.hbm_to_vmem [thread:$0]  (!%p1650_p6), %s1500_s6, 4096, %s1502_s22, %s1504_s0, %s1309_s2, %s1309_s2, %s1310_s15  }
  0x81   : > { %p1651_p8 = scmp.ne.s32.totalorder %s1645_s24, 0 }
  0x82   : > { %s271_s27 = sand.u32 (!%p1651_p8), 1, %s1284_s16   ;;  %p1652_p5 = scmp.ne.s32.totalorder (!%p1651_p8), %s1644_s23, 0 }
  0x83   : > { %269 = sbr.rel (%p1651_p8) target bundleno = 452 (0x1c4), region = 36  ;;  %s864_s29 = sshll.u32 (!%p1651_p8), %s271_s27, 5 }
  0x84   : > { %s272_s5 = scalar_lea.sflag (!%p1651_p8), [#allocation4], %s271_s27  ;;  %s1533_s14 = scalar_lea.vmem (!%p1651_p8), [#allocation3], %s864_s29 }
  0x8a   : > { %1259 = dma.done.wait (%p1652_p5), %s272_s5, 512  }
  0x8b   : > { %1261 = vsyncadd (%p1652_p5), %s272_s5, 4294966784  ;;  %s280_s7 = sand.u32 1, %s1369_s21   ;;  %s865_s28 = sshll.u32 %s271_s27, 8 }
  0x8c   : > { %s281_s0 = scalar_lea.sflag [#allocation7], %s280_s7  ;;  %s1540_s22 = scalar_lea.vmem [#allocation6], %s865_s28 }
  0x8d   : > { %1263 = dma.done.wait (%p1652_p5), %s281_s0, 4096  }
  0x8e   : > { %1265 = vsyncadd (%p1652_p5), %s281_s0, 4294963200  ;;  %p1653_p6 = scmp.eq.s32.totalorder %s1369_s21, 0 }
  0x90   : > { %1267 = dma.done.wait (%p1653_p6), [#allocation7], 16   ;;  %p1654_p10 = pmov %p1653_p6 }
  0x91   : > { %p1655_p0 = pmov %p1653_p6 }
  0x92   : > { %1269 = vsyncadd (%p1654_p10), [#allocation7], 4294967280 }
  0x93   : > { %1271 = dma.done.wait (%p1655_p0), [#allocation10], 16   ;;  %p1656_p11 = pmov %p1655_p0 }
  0x94   : > { %p868_p3 = scmp.ne.s32.totalorder %s1292_s18, 0 }
  0x95   : > { %1273 = vsyncadd (%p1656_p11), [#allocation10], 4294967280  ;;  %v1311_v0 = vmov (!%p868_p3), 0.0  }
  0x96   : > { %325 = sbr.rel (%p868_p3) target bundleno = 157 (0x9d), region = 56  ;;  %326 = vst [vmem:[#allocation2] sm:$0xff] (!%p868_p3), %v1311_v0  ;;  %327 = vst [vmem:[#allocation2 + $0x8] sm:$0xff] (!%p868_p3), %v1311_v0 }
  0x9d PF: > { %v1054_v1 = vld [vmem:[%s1540_s22 + $0x40] sm:$0xff]   ;;  %v1058_v5 = vld [vmem:[%s1540_s22 + $0x48] sm:$0xff]   ;;  %v1062_v9 = vld [vmem:[%s1540_s22 + $0x50] sm:$0xff]   ;;  %p905_p12 = scmp.ne.s32.totalorder %s1292_s18, 1 }
  0x9e   : > { %v1055_v2 = vld [vmem:[%s1540_s22 + $0xc0] sm:$0xff]   ;;  %914 = vmatprep.subr.bf16.mxu0 %v1054_v1  ;;  %v1059_v6 = vld [vmem:[%s1540_s22 + $0xc8] sm:$0xff]   ;;  %v1063_v10 = vld [vmem:[%s1540_s22 + $0xd0] sm:$0xff]  }
  0x9f   : > { %v1056_v3 = vld [vmem:[%s1540_s22] sm:$0xff]   ;;  %936 = vmatprep.subr.bf16.mxu1 %v1055_v2  ;;  %v1060_v7 = vld [vmem:[%s1540_s22 + $0x8] sm:$0xff]   ;;  %v1064_v11 = vld [vmem:[%s1540_s22 + $0x10] sm:$0xff]  }
  0xa0   : > { %v1057_v4 = vld [vmem:[%s1540_s22 + $0x80] sm:$0xff]   ;;  %915 = vmatpush3.bf16.msra.mxu0 %v1056_v3  ;;  %v1061_v8 = vld [vmem:[%s1540_s22 + $0x88] sm:$0xff]   ;;  %v1065_v12 = vld [vmem:[%s1540_s22 + $0x90] sm:$0xff]  }
  0xa1   : > { %937 = vmatpush3.bf16.msra.mxu1 %v1057_v4  ;;  %916 = vmatprep.subr.bf16.mxu0 %v1058_v5  ;;  %v1066_v13 = vld [vmem:[%s1540_s22 + $0x58] sm:$0xff]   ;;  %v1070_v17 = vld [vmem:[%s1540_s22 + $0x60] sm:$0xff]   ;;  %v1074_v21 = vld [vmem:[%s1540_s22 + $0x68] sm:$0xff]  }
  0xa2   : > { %938 = vmatprep.subr.bf16.mxu1 %v1059_v6  ;;  %v1067_v14 = vld [vmem:[%s1540_s22 + $0xd8] sm:$0xff]   ;;  %v1071_v18 = vld [vmem:[%s1540_s22 + $0xe0] sm:$0xff]   ;;  %v1075_v22 = vld [vmem:[%s1540_s22 + $0xe8] sm:$0xff]  }
  0xa3   : > { %v1068_v15 = vld [vmem:[%s1540_s22 + $0x18] sm:$0xff]   ;;  %v1072_v19 = vld [vmem:[%s1540_s22 + $0x20] sm:$0xff]   ;;  %v1076_v23 = vld [vmem:[%s1540_s22 + $0x28] sm:$0xff]  }
  0xa4   : > { %917 = vmatpush3.bf16.msra.mxu0 %v1060_v7  ;;  %v1069_v16 = vld [vmem:[%s1540_s22 + $0x98] sm:$0xff]   ;;  %v1073_v20 = vld [vmem:[%s1540_s22 + $0xa0] sm:$0xff]   ;;  %v1077_v24 = vld [vmem:[%s1540_s22 + $0xa8] sm:$0xff]  }
  0xa5   : > { %939 = vmatpush3.bf16.msra.mxu1 %v1061_v8  ;;  %918 = vmatprep.subr.bf16.mxu0 %v1062_v9  ;;  %v1078_v25 = vld [vmem:[%s1540_s22 + $0x70] sm:$0xff]   ;;  %v1082_v29 = vld [vmem:[%s1540_s22 + $0x78] sm:$0xff]   ;;  %v906_v56 = vld [vmem:[#allocation8] ss:$0 sm:$0xff] (!%p905_p12) }
  0xa6   : > { %940 = vmatprep.subr.bf16.mxu1 %v1063_v10  ;;  %v1079_v26 = vld [vmem:[%s1540_s22 + $0xf0] sm:$0xff]   ;;  %v1083_v30 = vld [vmem:[%s1540_s22 + $0xf8] sm:$0xff]   ;;  %v907_v57 = vld [vmem:[#allocation9] ss:$0 sm:$0xff] (!%p905_p12) }
  0xa7   : > { %v1080_v27 = vld [vmem:[%s1540_s22 + $0x30] sm:$0xff]   ;;  %v1084_v31 = vld [vmem:[%s1540_s22 + $0x38] sm:$0xff]  }
  0xa8   : > { %919 = vmatpush3.bf16.msra.mxu0 %v1064_v11  ;;  %v1081_v28 = vld [vmem:[%s1540_s22 + $0xb0] sm:$0xff]   ;;  %v1085_v32 = vld [vmem:[%s1540_s22 + $0xb8] sm:$0xff]  }
  0xa9   : > { %941 = vmatpush3.bf16.msra.mxu1 %v1065_v12  ;;  %920 = vmatprep.subr.bf16.mxu0 %v1066_v13  ;;  %v1086_v33 = vld [vmem:[%s1533_s14] ss:$16 sps:$4 sm:$0xff]   ;;  %v1088_v34 = vld [vmem:[%s1533_s14 + $0x4] ss:$16 sps:$4 sm:$0xff]   ;;  %v1089_v35 = vld [vmem:[%s1533_s14 + $0x8] ss:$16 sps:$4 sm:$0xff]  }
  0xaa   : > { %942 = vmatprep.subr.bf16.mxu1 %v1067_v14  ;;  %v1091_v36 = vld [vmem:[%s1533_s14 + $0xc] ss:$16 sps:$4 sm:$0xff]   ;;  %642 = vmatprep.mubr.bf16.mxu0 %v1088_v34  ;;  %v328_v46 = vld [vmem:[#allocation2] sm:$0xff] }
  0xab   : > { %683 = vmatprep.mubr.bf16.mxu1 %v1091_v36  ;;  %v329_v51 = vld [vmem:[#allocation2 + $0x8] sm:$0xff] }
  0xac   : > { %921 = vmatpush3.bf16.msra.mxu0 %v1068_v15 }
  0xad   : > { %943 = vmatpush3.bf16.msra.mxu1 %v1069_v16  ;;  %922 = vmatprep.subr.bf16.mxu0 %v1070_v17 }
  0xae   : > { %944 = vmatprep.subr.bf16.mxu1 %v1071_v18 }
  0xb0   : > { %923 = vmatpush3.bf16.msra.mxu0 %v1072_v19 }
  0xb1   : > { %945 = vmatpush3.bf16.msra.mxu1 %v1073_v20  ;;  %924 = vmatprep.subr.bf16.mxu0 %v1074_v21 }
  0xb2   : > { %946 = vmatprep.subr.bf16.mxu1 %v1075_v22 }
  0xb4   : > { %925 = vmatpush3.bf16.msra.mxu0 %v1076_v23 }
  0xb5   : > { %947 = vmatpush3.bf16.msra.mxu1 %v1077_v24  ;;  %926 = vmatprep.subr.bf16.mxu0 %v1078_v25 }
  0xb6   : > { %948 = vmatprep.subr.bf16.mxu1 %v1079_v26 }
  0xb8   : > { %927 = vmatpush3.bf16.msra.mxu0 %v1080_v27 }
  0xb9   : > { %949 = vmatpush3.bf16.msra.mxu1 %v1081_v28  ;;  %928 = vmatprep.subr.bf16.mxu0 %v1082_v29 }
  0xba   : > { %950 = vmatprep.subr.bf16.mxu1 %v1083_v30 }
  0xbc   : > { %929 = vmatpush3.bf16.msra.mxu0 %v1084_v31 }
  0xbd   : > { %951 = vmatpush3.bf16.msra.mxu1 %v1085_v32 }
  0xbf   : > { %643 = vmatmul.mubr.bf16.vlgmr.msra.gmra.mrb[0].mxu0 %v1086_v33 }
  0xc0   : > { %684 = vmatmul.mubr.bf16.vlgmr.msra.gmra.mrb[0].mxu1 %v1089_v35 }
 0x192   : > { %v930_v37 = vpop.f32.mrb[0].mxu0 }
 0x193   : > { %v952_v38 = vpop.f32.mrb[0].mxu1  ;;  %v931_v39 = vpop.f32.mrb[1].mxu0 }
 0x194   : > { %v932_v40 = vadd.f32 %v931_v39, %v930_v37  ;;  %v953_v41 = vpop.f32.mrb[1].mxu1  ;;  %v933_v42 = vpop.f32.mrb[2].mxu0 }
 0x195   : > { %v954_v43 = vadd.f32 %v953_v41, %v952_v38  ;;  %v955_v44 = vpop.f32.mrb[2].mxu1  ;;  %v934_v45 = vpop.f32.mrb[3].mxu0 }
 0x196   : > { %v935_v47 = vadd.f32 %v934_v45, %v933_v42  ;;  %v956_v48 = vpop.f32.mrb[3].mxu1 }
 0x197   : > { %v686_v49 = vadd.f32 %v954_v43, %v932_v40  ;;  %v957_v50 = vadd.f32 %v956_v48, %v955_v44  ;;  %699 = sbr.rel (%p905_p12) target bundleno = 426 (0x1aa), region = 60 }
 0x199   : > { %v692_v52 = vadd.f32 %v686_v49, %v328_v46  ;;  %v689_v53 = vadd.f32 %v957_v50, %v935_v47 }
 0x19b   : > { %694 = vst [vmem:[#allocation2] sm:$0xff] %v692_v52  ;;  %v693_v54 = vadd.f32 %v689_v53, %v329_v51 }
 0x19d   : > { %695 = vst [vmem:[#allocation2 + $0x8] sm:$0xff] %v693_v54 }
 0x1a2   : > { %v700_v55 = vld [vmem:[#allocation2] sm:$0xff] }
 0x1a3   : > { %v709_v58 = vmul.f32 %v906_v56, %v700_v55 }
 0x1a4   : > { %v701_v59 = vld [vmem:[#allocation2 + $0x8] sm:$0xff] }
 0x1a5   : > { %v710_v60 = vmul.f32 %v906_v56, %v701_v59  ;;  %v718_v61 = vadd.f32 %v907_v57, %v709_v58 }
 0x1a7   : > { %v719_v62 = vadd.f32 %v907_v57, %v710_v60  ;;  %720 = vst [vmem:[#allocation11] sm:$0xff] %v718_v61 }
 0x1a9   : > { %721 = vst [vmem:[#allocation11 + $0x8] sm:$0xff] %v719_v62 }
 0x1aa PF: > { %p993_p1 = scmp.eq.s32.totalorder %s1369_s21, 1  ;;  %s1312_s23 = smov [#allocation11]  }
 0x1ab   : > { %s732_s24 = sshll.u32 %s1312_s23, 4  ;;  %s733_s24 = int_to_ptr.vmem [resolvable:$true] %s732_s24 }
 0x1ac   : > { %s1208_s6 = scalar_lea.vmem %s733_s24, 256  ;;  %p1215_p7 = scmp.lt.s32.totalorder %s733_s24, %s733_s24 }
 0x1ad   : > { %p1209_p2 = scmp.ne.s32.totalorder %s733_s24, %s1208_s6  ;;  %p1216_p9 = scmp.lt.s32.totalorder %s1208_s6, %s1208_s6 }
 0x1af   : > { %p1210_p13 = pnand %p1209_p2, %p993_p1  ;;  %p1217_p8 = por %p1216_p9, %p1215_p7 }
 0x1b1   : > { %p1211_p4 = pneg %p1210_p13 }
 0x1b3   : > { %p1218_p5 = pnand %p1217_p8, %p1211_p4 }
 0x1b5   : > { %1221 = shalt.err (!%p1218_p5)
}
 0x1b6   : > { %s1222_s10 = scalar_lea.hbm %s1637_s4, 256 }
 0x1b7   : > { %p1223_p6 = scmp.ne.s32.totalorder %s1637_s4, %s1222_s10  ;;  %p1228_p11 = scmp.lt.u32.totalorder %s1222_s10, %s1637_s4 }
 0x1b9   : > { %p1224_p10 = pnand %p1223_p6, %p993_p1 }
 0x1bb   : > { %p1225_p0 = pneg %p1224_p10 }
 0x1bd   : > { %p1230_p3 = pnand %p1228_p11, %p1225_p0 }
 0x1bf   : > { %1233 = shalt.err (!%p1230_p3)
}
 0x1c0   : > { %s1313_s13 = smov 128   ;;  %s1314_s2 = smov 8  }
 0x1c1   : > { %971 = dma.vmem_to_hbm [thread:$0]  (%p993_p1), %s733_s24, 256, %s1637_s4, [#allocation5], %s1313_s13, %s1313_s13, %s1314_s2  }
 0x1c2   : > { %1275 = dma.done.wait (%p993_p1), [#allocation5], 256  }
 0x1c3   : > { %1277 = vsyncadd (%p993_p1), [#allocation5], 4294967040 }
 0x1c4 PF: > { %s22_s20 = sadd.s32 1, %s1300_s20   ;;  %s1657_s15 = smov %s1284_s16 }
 0x1c5   : > { %p19_p12 = scmp.ge.s32.totalorder %s22_s20, 4   ;;  %s1658_s16 = smov %s1288_s17 }
 0x1c6   : > { %s1659_s17 = smov %s1464_s9  ;;  %s1660_s18 = smov %s1296_s19 }
 0x1c7   : > { %s1661_s19 = smov %s1663_s25  ;;  %21 = sbr.rel (!%p19_p12) target bundleno = 11 (0xb), region = 105 }
 0x1ce   :  { %748 = vsyncpa [#allocation4], 1 }
 0x1cf   :  { %750 = vsyncpa [#allocation4 + $0x1], 1 }
 0x1d0   :  { %751 = vsyncpa [#allocation7], 1 }
 0x1d1   :  { %753 = vsyncpa [#allocation7 + $0x1], 1 }
 0x1d2   :  { %754 = vsyncpa [#allocation10], 1 }
 0x1d3   :  { %755 = vsyncpa [#allocation5], 1 }
 0x1d4   :  { %757 = vsyncpa [#allocation5 + $0x1], 1 }

</bundles_post_ra>
